<compile_context>
chip_gen: v7x
topology: tpu7x:2x2x1
jax: 0.10.0
libtpu: 0.0.40
codegen_flags: <defaults>
</compile_context>

<pallas_src>
import functools

import jax
import jax.numpy as jnp
from jax import lax
from jax.experimental import pallas as pl
from jax.experimental.pallas import tpu as pltpu


def seq_model_kernel(gx_ref, len_ref, feats_ref, whh_ref,
                     w1_ref, b1_ref, w2a_ref, w2b_ref, b2_ref,
                     w3_ref, b3_ref, o_ref, *, T, B, H, mxu_dtype):
    H2 = 2 * H
    H8 = 8 * H

    # Hoisted loop invariants (read once; whh is ~8 vregs at H=32).
    whh = whh_ref[...]                                     # (2H, 8H) mxu dtype
    len_bc = jnp.broadcast_to(len_ref[...], (B, H2))       # (B, 2H) int32
    lane2 = lax.broadcasted_iota(jnp.int32, (B, H2), 1)
    lane_fwd = lane2 < H                                   # fwd half-lanes
    lane8 = lax.broadcasted_iota(jnp.int32, (B, H8), 1)
    is_g = jnp.logical_and(lane8 >= 4 * H, lane8 < 6 * H)  # g-gate slab
    g_scale = jnp.where(is_g, 2.0, 1.0)
    g_shift = jnp.where(is_g, 1.0, 0.0)

    # LSTM state in registers: forward direction lanes 0:H, backward H:2H.
    h = jnp.zeros((B, H2), jnp.float32)
    c = jnp.zeros((B, H2), jnp.float32)
    mx = jnp.full((B, H2), -jnp.inf, jnp.float32)

    # Fully unrolled recurrence (T static & small).
    # TODO(synk): for larger T switch to a time-chunk grid axis ("arbitrary")
    # with h/c/mx in VMEM scratch and a pl.when-gated head; budget the chunk
    # for v7x's 64 MiB VMEM via pltpu.CompilerParams(vmem_limit_bytes=...).
    for t in range(T):
        # One fully-used block-diagonal recurrent matmul for both directions.
        gh = jnp.dot(h.astype(mxu_dtype), whh,
                     preferred_element_type=jnp.float32)           # (B, 8H)
        gates = gx_ref[t] + gh                                     # (B, 8H)

        # Single-sigmoid gate activation: tanh(x) = 2*sigmoid(2x) - 1 on the
        # g slab, plain sigmoid elsewhere -> one EUP pass over the block.
        s = jax.nn.sigmoid(gates * g_scale)
        act = s * g_scale - g_shift
        # Gate-major / direction-minor column order: each slab is (B, 2H) and
        # lane-aligned with the h/c state layout.
        i_g = act[:, 0 * H2:1 * H2]
        f_g = act[:, 1 * H2:2 * H2]
        g_g = act[:, 2 * H2:3 * H2]
        o_g = act[:, 3 * H2:4 * H2]
        c_new = f_g * c + i_g * g_g
        h_new = o_g * jnp.tanh(c_new)

        # In-kernel length mask (fwd time t, bwd time T-1-t; both static here).
        t_idx = jnp.where(lane_fwd, t, T - 1 - t)
        valid = t_idx < len_bc
        h = jnp.where(valid, h_new, h)         # packed-seq: freeze past length
        c = jnp.where(valid, c_new, c)
        # pad_packed_sequence semantics: padded steps contribute exactly 0.
        mx = jnp.maximum(mx, jnp.where(valid, h_new, 0.0))

    # MLP head.  mx IS cat(max_fwd, max_bwd) along lanes, so fc1 is one dot;
    # fc2 is split so no in-kernel concatenation with feats is needed.
    # TODO(synk): dropout layers are identity (eval mode); batchnorm unused.
    h1 = jnp.maximum(
        jnp.dot(mx.astype(mxu_dtype), w1_ref[...],
                preferred_element_type=jnp.float32) + b1_ref[...], 0.0)
    h2 = jnp.maximum(
        jnp.dot(h1.astype(mxu_dtype), w2a_ref[...],
                preferred_element_type=jnp.float32)
        + jnp.dot(feats_ref[...].astype(mxu_dtype), w2b_ref[...],
                  preferred_element_type=jnp.float32)
        + b2_ref[...], 0.0)
    # Lane-dense (B, 128) store; the wrapper slices off the real out_class cols.
    o_ref[...] = (jnp.dot(h2.astype(mxu_dtype), w3_ref[...],
                          preferred_element_type=jnp.float32) + b3_ref[...])


def init_params(key, vocab_size, embed_size, hidden_size, ext_feats_size, out_class):
    H = hidden_size
    ks = jax.random.split(key, 12)

    def xavier(k, shape):
        fan_in, fan_out = shape[0], shape[1]
        limit = (6.0 / (fan_in + fan_out)) ** 0.5
        return jax.random.uniform(k, shape, jnp.float32, -limit, limit)

    params = {
        "embedding": jax.random.normal(ks[0], (vocab_size, embed_size), jnp.float32) * 0.1,
        # LSTM weights stored transposed for x @ W form; gate order (i, f, g, o)
        "wih_f": xavier(ks[1], (embed_size, 4 * H)),
        "whh_f": xavier(ks[2], (H, 4 * H)),
        "b_f": jax.random.normal(ks[3], (1, 4 * H), jnp.float32) * 0.01,
        "wih_b": xavier(ks[4], (embed_size, 4 * H)),
        "whh_b": xavier(ks[5], (H, 4 * H)),
        "b_b": jax.random.normal(ks[6], (1, 4 * H), jnp.float32) * 0.01,
        "w1": xavier(ks[7], (2 * H, 128)),
        "b1": jnp.zeros((1, 128), jnp.float32),
        "w2": xavier(ks[8], (128 + ext_feats_size, 64)),
        "b2": jnp.zeros((1, 64), jnp.float32),
        "w3": xavier(ks[9], (64, out_class)),
        "b3": jnp.zeros((1, out_class), jnp.float32),
    }
    return params


@functools.partial(jax.jit, static_argnames=("hidden_size", "out_class", "mxu_dtype"))
def sequence_model_forward(seq, seq_len, feats, params, *, hidden_size,
                           out_class, mxu_dtype=jnp.bfloat16):
    """seq: (T, B) int32, seq_len: (B,) int32, feats: (B, F) float32."""
    H = hidden_size
    T, B = seq.shape

    # Fold embedding + input projection + bias into per-token tables (vocab is
    # tiny: vocab*8H ~ 50 KiB).  The token gather stays wrapper-side JAX glue.
    # TODO(synk): for large vocab drop this fold and feed (T*B, E) embeddings
    # to an in-kernel (T*B, E) @ (E, 8H) projection instead (gather traffic
    # would otherwise exceed the matmul).
    proj_f = params["embedding"] @ params["wih_f"] + params["b_f"]   # (V, 4H)
    proj_b = params["embedding"] @ params["wih_b"] + params["b_b"]   # (V, 4H)
    gx_f = proj_f[seq]                        # (T, B, 4H)
    gx_b = proj_b[seq][::-1]                  # (T, B, 4H) bwd time pre-reversed
    # Gate-major / direction-minor columns: [i_f i_b | f_f f_b | g_f g_b | o_f o_b]
    gx = jnp.concatenate([gx_f.reshape(T, B, 4, 1, H),
                          gx_b.reshape(T, B, 4, 1, H)], axis=3).reshape(T, B, 8 * H)

    # Block-diagonal recurrent weights in the same column order: forward-h rows
    # (0:H) only feed *_f columns, backward-h rows (H:2H) only *_b columns.
    zblk = jnp.zeros((H, 4, 1, H), jnp.float32)
    top = jnp.concatenate([params["whh_f"].reshape(H, 4, 1, H), zblk],
                          axis=2).reshape(H, 8 * H)
    bot = jnp.concatenate([zblk, params["whh_b"].reshape(H, 4, 1, H)],
                          axis=2).reshape(H, 8 * H)
    whh_aug = jnp.concatenate([top, bot], axis=0).astype(mxu_dtype)   # (2H, 8H)

    # Head weights as bf16 MXU operands (f32 accumulation); biases stay f32.
    w1 = params["w1"].astype(mxu_dtype)                 # (2H, 128)
    w2a = params["w2"][:128].astype(mxu_dtype)          # (128, 64)
    w2b = params["w2"][128:].astype(mxu_dtype)          # (F, 64)
    out_pad = 128                                       # lane-dense fc3 output
    w3p = (jnp.zeros((64, out_pad), jnp.float32)
           .at[:, :out_class].set(params["w3"]).astype(mxu_dtype))
    b3p = jnp.zeros((1, out_pad), jnp.float32).at[:, :out_class].set(params["b3"])

    len_col = seq_len.astype(jnp.int32)[:, None]        # (B, 1) -> VMEM column

    # TODO(synk): at larger B add a leading "parallel" batch grid axis so both
    # v7x TensorCores are used; per-step cost is nearly flat in B until the
    # batch rows approach the MXU height, so batch also scales almost free.
    kernel = functools.partial(seq_model_kernel, T=T, B=B, H=H, mxu_dtype=mxu_dtype)
    n_in = 11
    out = pl.pallas_call(
        kernel,
        out_shape=jax.ShapeDtypeStruct((B, out_pad), jnp.float32),
        in_specs=[pl.BlockSpec(memory_space=pltpu.MemorySpace.VMEM)] * n_in,
        out_specs=pl.BlockSpec(memory_space=pltpu.MemorySpace.VMEM),
    )(gx, len_col, feats, whh_aug,
      w1, params["b1"], w2a, w2b, params["b2"], w3p, b3p)
    return out[:, :out_class]


def reference_forward(seq, seq_len, feats, params, hidden_size, out_class):
    """Pure-JAX reference mirroring the PyTorch forward (eval mode)."""
    H = hidden_size
    emb = params["embedding"][seq]
    T, B, E = emb.shape
    mask = (jnp.arange(T)[:, None] < seq_len[None, :]).astype(jnp.float32)[..., None]

    def cell(x_t, h, c, wih, whh, b):
        gates = x_t @ wih + h @ whh + b
        i = jax.nn.sigmoid(gates[:, :H])
        f = jax.nn.sigmoid(gates[:, H:2 * H])
        g = jnp.tanh(gates[:, 2 * H:3 * H])
        o = jax.nn.sigmoid(gates[:, 3 * H:])
        c_new = f * c + i * g
        return o * jnp.tanh(c_new), c_new

    hf = jnp.zeros((B, H)); cf = jnp.zeros((B, H))
    hb = jnp.zeros((B, H)); cb = jnp.zeros((B, H))
    mxf = jnp.full((B, H), -jnp.inf); mxb = jnp.full((B, H), -jnp.inf)
    for t in range(T):
        hn, cn = cell(emb[t], hf, cf, params["wih_f"], params["whh_f"], params["b_f"])
        hf = jnp.where(mask[t] > 0, hn, hf); cf = jnp.where(mask[t] > 0, cn, cf)
        mxf = jnp.maximum(mxf, hn * mask[t])
        tb = T - 1 - t
        hnb, cnb = cell(emb[tb], hb, cb, params["wih_b"], params["whh_b"], params["b_b"])
        hb = jnp.where(mask[tb] > 0, hnb, hb); cb = jnp.where(mask[tb] > 0, cnb, cb)
        mxb = jnp.maximum(mxb, hnb * mask[tb])

    h2d = jnp.concatenate([mxf, mxb], axis=1)
    h1 = jax.nn.relu(h2d @ params["w1"] + params["b1"])
    h1c = jnp.concatenate([h1, feats], axis=1)
    h2 = jax.nn.relu(h1c @ params["w2"] + params["b2"])
    return h2 @ params["w3"] + params["b3"]


if __name__ == "__main__":
    # Small, deterministic problem sizes.
    vocab_size = 50
    embed_size = 32
    hidden_size = 32
    ext_feats_size = 4
    out_class = 3
    T, B = 8, 8

    key = jax.random.PRNGKey(0)
    k_seq, k_feats = jax.random.split(key, 2)
    seq = jax.random.randint(k_seq, (T, B), 0, vocab_size, dtype=jnp.int32)
    # lengths sorted descending (enforce_sorted=True semantics), max length == T
    seq_len = jnp.array([8, 8, 7, 6, 5, 4, 3, 2], dtype=jnp.int32)
    feats = jax.random.normal(k_feats, (B, ext_feats_size), jnp.float32)

    params = init_params(jax.random.PRNGKey(1), vocab_size, embed_size,
                         hidden_size, ext_feats_size, out_class)

    # Default (bf16 MXU operands) and an f32-MXU variant for a tight check.
    out_bf16 = sequence_model_forward(seq, seq_len, feats, params,
                                      hidden_size=hidden_size, out_class=out_class)
    out_bf16 = jax.block_until_ready(out_bf16)
    out_f32 = sequence_model_forward(seq, seq_len, feats, params,
                                     hidden_size=hidden_size, out_class=out_class,
                                     mxu_dtype=jnp.float32)
    out_f32 = jax.block_until_ready(out_f32)

    ref = reference_forward(seq, seq_len, feats, params, hidden_size, out_class)
    assert out_bf16.shape == (B, out_class)
    assert bool(jnp.all(jnp.isfinite(out_bf16)))
    assert bool(jnp.all(jnp.isfinite(out_f32)))
    # Tight check on the f32-operand kernel (same structure, no bf16 rounding).
    assert bool(jnp.allclose(out_f32, ref, rtol=1e-2, atol=1e-2)), (out_f32, ref)
    # bf16 MXU operands trade a small rounding error for halved MXU push
    # bandwidth / weight footprint; checked with a looser tolerance.
    assert bool(jnp.allclose(out_bf16, ref, rtol=5e-2, atol=5e-2)), (out_bf16, ref)
    print("KERNEL_OK")
</pallas_src>

<mosaic_0001>
module attributes {stable_mosaic.version = 11 : i64} {
  func.func @seq_model_kernel(%arg0: memref<8x8x256xf32, #tpu.memory_space<vmem>>, %arg1: memref<8x1xi32, #tpu.memory_space<vmem>>, %arg2: memref<8x4xf32, #tpu.memory_space<vmem>>, %arg3: memref<64x256xbf16, #tpu.memory_space<vmem>>, %arg4: memref<64x128xbf16, #tpu.memory_space<vmem>>, %arg5: memref<1x128xf32, #tpu.memory_space<vmem>>, %arg6: memref<128x64xbf16, #tpu.memory_space<vmem>>, %arg7: memref<4x64xbf16, #tpu.memory_space<vmem>>, %arg8: memref<1x64xf32, #tpu.memory_space<vmem>>, %arg9: memref<64x128xbf16, #tpu.memory_space<vmem>>, %arg10: memref<1x128xf32, #tpu.memory_space<vmem>>, %arg11: memref<8x128xf32, #tpu.memory_space<vmem>>) attributes {dimension_semantics = [], scalar_prefetch = 0 : i64, scratch_operands = 0 : i64, tpu.core_type = #tpu.core_type<tc>} {
    %c0 = arith.constant 0 : index
    %c0_0 = arith.constant 0 : index
    %0 = vector.load %arg3[%c0, %c0_0] : memref<64x256xbf16, #tpu.memory_space<vmem>>, vector<64x256xbf16>
    %c0_1 = arith.constant 0 : index
    %c0_2 = arith.constant 0 : index
    %1 = vector.load %arg1[%c0_1, %c0_2] : memref<8x1xi32, #tpu.memory_space<vmem>>, vector<8x1xi32>
    %2 = vector.shape_cast %1 : vector<8x1xi32> to vector<8x1xi32>
    %3 = vector.broadcast %2 : vector<8x1xi32> to vector<8x64xi32>
    %4 = tpu.iota {dimensions = array<i32: 1>} : vector<8x64xi32>
    %c32_i32 = arith.constant 32 : i32
    %5 = vector.broadcast %c32_i32 : i32 to vector<8x64xi32>
    %6 = arith.cmpi slt, %4, %5 : vector<8x64xi32>
    %7 = tpu.iota {dimensions = array<i32: 1>} : vector<8x256xi32>
    %c128_i32 = arith.constant 128 : i32
    %8 = vector.broadcast %c128_i32 : i32 to vector<8x256xi32>
    %9 = arith.cmpi sge, %7, %8 : vector<8x256xi32>
    %c192_i32 = arith.constant 192 : i32
    %10 = vector.broadcast %c192_i32 : i32 to vector<8x256xi32>
    %11 = arith.cmpi slt, %7, %10 : vector<8x256xi32>
    %12 = arith.andi %9, %11 : vector<8x256xi1>
    %cst = arith.constant 2.000000e+00 : f32
    %cst_3 = arith.constant 1.000000e+00 : f32
    %13 = vector.broadcast %cst : f32 to vector<8x256xf32>
    %14 = vector.broadcast %cst_3 : f32 to vector<8x256xf32>
    %15 = arith.select %12, %13, %14 : vector<8x256xi1>, vector<8x256xf32>
    %cst_4 = arith.constant 1.000000e+00 : f32
    %cst_5 = arith.constant 0.000000e+00 : f32
    %16 = vector.broadcast %cst_4 : f32 to vector<8x256xf32>
    %17 = vector.broadcast %cst_5 : f32 to vector<8x256xf32>
    %18 = arith.select %12, %16, %17 : vector<8x256xi1>, vector<8x256xf32>
    %cst_6 = arith.constant 0.000000e+00 : f32
    %19 = vector.broadcast %cst_6 : f32 to vector<8x64xf32>
    %cst_7 = arith.constant 0.000000e+00 : f32
    %20 = vector.broadcast %cst_7 : f32 to vector<8x64xf32>
    %cst_8 = arith.constant 0xFF800000 : f32
    %21 = vector.broadcast %cst_8 : f32 to vector<8x64xf32>
    %22 = arith.truncf %19 : vector<8x64xf32> to vector<8x64xbf16>
    %cst_9 = arith.constant dense<0.000000e+00> : vector<8x256xf32>
    %23 = tpu.matmul %22, %0, %cst_9 {dimension_numbers = #tpu.dot_dimension_numbers<[1], [0], [0], [1], [0, 0, 1, 1], [], []>} : vector<8x64xbf16>, vector<64x256xbf16>, vector<8x256xf32> -> vector<8x256xf32>
    %c0_10 = arith.constant 0 : index
    %c0_11 = arith.constant 0 : index
    %c0_12 = arith.constant 0 : index
    %24 = vector.load %arg0[%c0_10, %c0_11, %c0_12] : memref<8x8x256xf32, #tpu.memory_space<vmem>>, vector<1x8x256xf32>
    %25 = vector.shape_cast %24 : vector<1x8x256xf32> to vector<8x256xf32>
    %26 = arith.addf %25, %23 : vector<8x256xf32>
    %27 = arith.mulf %26, %15 : vector<8x256xf32>
    %28 = arith.negf %27 : vector<8x256xf32>
    %29 = math.exp %28 : vector<8x256xf32>
    %cst_13 = arith.constant 1.000000e+00 : f32
    %30 = vector.broadcast %cst_13 : f32 to vector<8x256xf32>
    %31 = arith.addf %30, %29 : vector<8x256xf32>
    %32 = arith.divf %30, %31 : vector<8x256xf32>
    %33 = arith.mulf %32, %15 : vector<8x256xf32>
    %34 = arith.subf %33, %18 : vector<8x256xf32>
    %35 = vector.extract_strided_slice %34 {offsets = [0, 0], sizes = [8, 64], strides = [1, 1]} : vector<8x256xf32> to vector<8x64xf32>
    %36 = vector.extract_strided_slice %34 {offsets = [0, 64], sizes = [8, 64], strides = [1, 1]} : vector<8x256xf32> to vector<8x64xf32>
    %37 = vector.extract_strided_slice %34 {offsets = [0, 128], sizes = [8, 64], strides = [1, 1]} : vector<8x256xf32> to vector<8x64xf32>
    %38 = vector.extract_strided_slice %34 {offsets = [0, 192], sizes = [8, 64], strides = [1, 1]} : vector<8x256xf32> to vector<8x64xf32>
    %39 = arith.mulf %36, %20 : vector<8x64xf32>
    %40 = arith.mulf %35, %37 : vector<8x64xf32>
    %41 = arith.addf %39, %40 : vector<8x64xf32>
    %42 = math.tanh %41 : vector<8x64xf32>
    %43 = arith.mulf %38, %42 : vector<8x64xf32>
    %c0_i32 = arith.constant 0 : i32
    %c7_i32 = arith.constant 7 : i32
    %44 = vector.broadcast %c0_i32 : i32 to vector<8x64xi32>
    %45 = vector.broadcast %c7_i32 : i32 to vector<8x64xi32>
    %46 = arith.select %6, %44, %45 : vector<8x64xi1>, vector<8x64xi32>
    %47 = arith.cmpi slt, %46, %3 : vector<8x64xi32>
    %48 = arith.select %47, %43, %19 : vector<8x64xi1>, vector<8x64xf32>
    %49 = arith.select %47, %41, %20 : vector<8x64xi1>, vector<8x64xf32>
    %cst_14 = arith.constant 0.000000e+00 : f32
    %50 = vector.broadcast %cst_14 : f32 to vector<8x64xf32>
    %51 = arith.select %47, %43, %50 : vector<8x64xi1>, vector<8x64xf32>
    %52 = arith.maximumf %21, %51 : vector<8x64xf32>
    %53 = arith.truncf %48 : vector<8x64xf32> to vector<8x64xbf16>
    %cst_15 = arith.constant dense<0.000000e+00> : vector<8x256xf32>
    %54 = tpu.matmul %53, %0, %cst_15 {dimension_numbers = #tpu.dot_dimension_numbers<[1], [0], [0], [1], [0, 0, 1, 1], [], []>} : vector<8x64xbf16>, vector<64x256xbf16>, vector<8x256xf32> -> vector<8x256xf32>
    %c1 = arith.constant 1 : index
    %c0_16 = arith.constant 0 : index
    %c0_17 = arith.constant 0 : index
    %55 = vector.load %arg0[%c1, %c0_16, %c0_17] : memref<8x8x256xf32, #tpu.memory_space<vmem>>, vector<1x8x256xf32>
    %56 = vector.shape_cast %55 : vector<1x8x256xf32> to vector<8x256xf32>
    %57 = arith.addf %56, %54 : vector<8x256xf32>
    %58 = arith.mulf %57, %15 : vector<8x256xf32>
    %59 = arith.negf %58 : vector<8x256xf32>
    %60 = math.exp %59 : vector<8x256xf32>
    %cst_18 = arith.constant 1.000000e+00 : f32
    %61 = vector.broadcast %cst_18 : f32 to vector<8x256xf32>
    %62 = arith.addf %61, %60 : vector<8x256xf32>
    %63 = arith.divf %61, %62 : vector<8x256xf32>
    %64 = arith.mulf %63, %15 : vector<8x256xf32>
    %65 = arith.subf %64, %18 : vector<8x256xf32>
    %66 = vector.extract_strided_slice %65 {offsets = [0, 0], sizes = [8, 64], strides = [1, 1]} : vector<8x256xf32> to vector<8x64xf32>
    %67 = vector.extract_strided_slice %65 {offsets = [0, 64], sizes = [8, 64], strides = [1, 1]} : vector<8x256xf32> to vector<8x64xf32>
    %68 = vector.extract_strided_slice %65 {offsets = [0, 128], sizes = [8, 64], strides = [1, 1]} : vector<8x256xf32> to vector<8x64xf32>
    %69 = vector.extract_strided_slice %65 {offsets = [0, 192], sizes = [8, 64], strides = [1, 1]} : vector<8x256xf32> to vector<8x64xf32>
    %70 = arith.mulf %67, %49 : vector<8x64xf32>
    %71 = arith.mulf %66, %68 : vector<8x64xf32>
    %72 = arith.addf %70, %71 : vector<8x64xf32>
    %73 = math.tanh %72 : vector<8x64xf32>
    %74 = arith.mulf %69, %73 : vector<8x64xf32>
    %c1_i32 = arith.constant 1 : i32
    %c6_i32 = arith.constant 6 : i32
    %75 = vector.broadcast %c1_i32 : i32 to vector<8x64xi32>
    %76 = vector.broadcast %c6_i32 : i32 to vector<8x64xi32>
    %77 = arith.select %6, %75, %76 : vector<8x64xi1>, vector<8x64xi32>
    %78 = arith.cmpi slt, %77, %3 : vector<8x64xi32>
    %79 = arith.select %78, %74, %48 : vector<8x64xi1>, vector<8x64xf32>
    %80 = arith.select %78, %72, %49 : vector<8x64xi1>, vector<8x64xf32>
    %cst_19 = arith.constant 0.000000e+00 : f32
    %81 = vector.broadcast %cst_19 : f32 to vector<8x64xf32>
    %82 = arith.select %78, %74, %81 : vector<8x64xi1>, vector<8x64xf32>
    %83 = arith.maximumf %52, %82 : vector<8x64xf32>
    %84 = arith.truncf %79 : vector<8x64xf32> to vector<8x64xbf16>
    %cst_20 = arith.constant dense<0.000000e+00> : vector<8x256xf32>
    %85 = tpu.matmul %84, %0, %cst_20 {dimension_numbers = #tpu.dot_dimension_numbers<[1], [0], [0], [1], [0, 0, 1, 1], [], []>} : vector<8x64xbf16>, vector<64x256xbf16>, vector<8x256xf32> -> vector<8x256xf32>
    %c2 = arith.constant 2 : index
    %c0_21 = arith.constant 0 : index
    %c0_22 = arith.constant 0 : index
    %86 = vector.load %arg0[%c2, %c0_21, %c0_22] : memref<8x8x256xf32, #tpu.memory_space<vmem>>, vector<1x8x256xf32>
    %87 = vector.shape_cast %86 : vector<1x8x256xf32> to vector<8x256xf32>
    %88 = arith.addf %87, %85 : vector<8x256xf32>
    %89 = arith.mulf %88, %15 : vector<8x256xf32>
    %90 = arith.negf %89 : vector<8x256xf32>
    %91 = math.exp %90 : vector<8x256xf32>
    %cst_23 = arith.constant 1.000000e+00 : f32
    %92 = vector.broadcast %cst_23 : f32 to vector<8x256xf32>
    %93 = arith.addf %92, %91 : vector<8x256xf32>
    %94 = arith.divf %92, %93 : vector<8x256xf32>
    %95 = arith.mulf %94, %15 : vector<8x256xf32>
    %96 = arith.subf %95, %18 : vector<8x256xf32>
    %97 = vector.extract_strided_slice %96 {offsets = [0, 0], sizes = [8, 64], strides = [1, 1]} : vector<8x256xf32> to vector<8x64xf32>
    %98 = vector.extract_strided_slice %96 {offsets = [0, 64], sizes = [8, 64], strides = [1, 1]} : vector<8x256xf32> to vector<8x64xf32>
    %99 = vector.extract_strided_slice %96 {offsets = [0, 128], sizes = [8, 64], strides = [1, 1]} : vector<8x256xf32> to vector<8x64xf32>
    %100 = vector.extract_strided_slice %96 {offsets = [0, 192], sizes = [8, 64], strides = [1, 1]} : vector<8x256xf32> to vector<8x64xf32>
    %101 = arith.mulf %98, %80 : vector<8x64xf32>
    %102 = arith.mulf %97, %99 : vector<8x64xf32>
    %103 = arith.addf %101, %102 : vector<8x64xf32>
    %104 = math.tanh %103 : vector<8x64xf32>
    %105 = arith.mulf %100, %104 : vector<8x64xf32>
    %c2_i32 = arith.constant 2 : i32
    %c5_i32 = arith.constant 5 : i32
    %106 = vector.broadcast %c2_i32 : i32 to vector<8x64xi32>
    %107 = vector.broadcast %c5_i32 : i32 to vector<8x64xi32>
    %108 = arith.select %6, %106, %107 : vector<8x64xi1>, vector<8x64xi32>
    %109 = arith.cmpi slt, %108, %3 : vector<8x64xi32>
    %110 = arith.select %109, %105, %79 : vector<8x64xi1>, vector<8x64xf32>
    %111 = arith.select %109, %103, %80 : vector<8x64xi1>, vector<8x64xf32>
    %cst_24 = arith.constant 0.000000e+00 : f32
    %112 = vector.broadcast %cst_24 : f32 to vector<8x64xf32>
    %113 = arith.select %109, %105, %112 : vector<8x64xi1>, vector<8x64xf32>
    %114 = arith.maximumf %83, %113 : vector<8x64xf32>
    %115 = arith.truncf %110 : vector<8x64xf32> to vector<8x64xbf16>
    %cst_25 = arith.constant dense<0.000000e+00> : vector<8x256xf32>
    %116 = tpu.matmul %115, %0, %cst_25 {dimension_numbers = #tpu.dot_dimension_numbers<[1], [0], [0], [1], [0, 0, 1, 1], [], []>} : vector<8x64xbf16>, vector<64x256xbf16>, vector<8x256xf32> -> vector<8x256xf32>
    %c3 = arith.constant 3 : index
    %c0_26 = arith.constant 0 : index
    %c0_27 = arith.constant 0 : index
    %117 = vector.load %arg0[%c3, %c0_26, %c0_27] : memref<8x8x256xf32, #tpu.memory_space<vmem>>, vector<1x8x256xf32>
    %118 = vector.shape_cast %117 : vector<1x8x256xf32> to vector<8x256xf32>
    %119 = arith.addf %118, %116 : vector<8x256xf32>
    %120 = arith.mulf %119, %15 : vector<8x256xf32>
    %121 = arith.negf %120 : vector<8x256xf32>
    %122 = math.exp %121 : vector<8x256xf32>
    %cst_28 = arith.constant 1.000000e+00 : f32
    %123 = vector.broadcast %cst_28 : f32 to vector<8x256xf32>
    %124 = arith.addf %123, %122 : vector<8x256xf32>
    %125 = arith.divf %123, %124 : vector<8x256xf32>
    %126 = arith.mulf %125, %15 : vector<8x256xf32>
    %127 = arith.subf %126, %18 : vector<8x256xf32>
    %128 = vector.extract_strided_slice %127 {offsets = [0, 0], sizes = [8, 64], strides = [1, 1]} : vector<8x256xf32> to vector<8x64xf32>
    %129 = vector.extract_strided_slice %127 {offsets = [0, 64], sizes = [8, 64], strides = [1, 1]} : vector<8x256xf32> to vector<8x64xf32>
    %130 = vector.extract_strided_slice %127 {offsets = [0, 128], sizes = [8, 64], strides = [1, 1]} : vector<8x256xf32> to vector<8x64xf32>
    %131 = vector.extract_strided_slice %127 {offsets = [0, 192], sizes = [8, 64], strides = [1, 1]} : vector<8x256xf32> to vector<8x64xf32>
    %132 = arith.mulf %129, %111 : vector<8x64xf32>
    %133 = arith.mulf %128, %130 : vector<8x64xf32>
    %134 = arith.addf %132, %133 : vector<8x64xf32>
    %135 = math.tanh %134 : vector<8x64xf32>
    %136 = arith.mulf %131, %135 : vector<8x64xf32>
    %c3_i32 = arith.constant 3 : i32
    %c4_i32 = arith.constant 4 : i32
    %137 = vector.broadcast %c3_i32 : i32 to vector<8x64xi32>
    %138 = vector.broadcast %c4_i32 : i32 to vector<8x64xi32>
    %139 = arith.select %6, %137, %138 : vector<8x64xi1>, vector<8x64xi32>
    %140 = arith.cmpi slt, %139, %3 : vector<8x64xi32>
    %141 = arith.select %140, %136, %110 : vector<8x64xi1>, vector<8x64xf32>
    %142 = arith.select %140, %134, %111 : vector<8x64xi1>, vector<8x64xf32>
    %cst_29 = arith.constant 0.000000e+00 : f32
    %143 = vector.broadcast %cst_29 : f32 to vector<8x64xf32>
    %144 = arith.select %140, %136, %143 : vector<8x64xi1>, vector<8x64xf32>
    %145 = arith.maximumf %114, %144 : vector<8x64xf32>
    %146 = arith.truncf %141 : vector<8x64xf32> to vector<8x64xbf16>
    %cst_30 = arith.constant dense<0.000000e+00> : vector<8x256xf32>
    %147 = tpu.matmul %146, %0, %cst_30 {dimension_numbers = #tpu.dot_dimension_numbers<[1], [0], [0], [1], [0, 0, 1, 1], [], []>} : vector<8x64xbf16>, vector<64x256xbf16>, vector<8x256xf32> -> vector<8x256xf32>
    %c4 = arith.constant 4 : index
    %c0_31 = arith.constant 0 : index
    %c0_32 = arith.constant 0 : index
    %148 = vector.load %arg0[%c4, %c0_31, %c0_32] : memref<8x8x256xf32, #tpu.memory_space<vmem>>, vector<1x8x256xf32>
    %149 = vector.shape_cast %148 : vector<1x8x256xf32> to vector<8x256xf32>
    %150 = arith.addf %149, %147 : vector<8x256xf32>
    %151 = arith.mulf %150, %15 : vector<8x256xf32>
    %152 = arith.negf %151 : vector<8x256xf32>
    %153 = math.exp %152 : vector<8x256xf32>
    %cst_33 = arith.constant 1.000000e+00 : f32
    %154 = vector.broadcast %cst_33 : f32 to vector<8x256xf32>
    %155 = arith.addf %154, %153 : vector<8x256xf32>
    %156 = arith.divf %154, %155 : vector<8x256xf32>
    %157 = arith.mulf %156, %15 : vector<8x256xf32>
    %158 = arith.subf %157, %18 : vector<8x256xf32>
    %159 = vector.extract_strided_slice %158 {offsets = [0, 0], sizes = [8, 64], strides = [1, 1]} : vector<8x256xf32> to vector<8x64xf32>
    %160 = vector.extract_strided_slice %158 {offsets = [0, 64], sizes = [8, 64], strides = [1, 1]} : vector<8x256xf32> to vector<8x64xf32>
    %161 = vector.extract_strided_slice %158 {offsets = [0, 128], sizes = [8, 64], strides = [1, 1]} : vector<8x256xf32> to vector<8x64xf32>
    %162 = vector.extract_strided_slice %158 {offsets = [0, 192], sizes = [8, 64], strides = [1, 1]} : vector<8x256xf32> to vector<8x64xf32>
    %163 = arith.mulf %160, %142 : vector<8x64xf32>
    %164 = arith.mulf %159, %161 : vector<8x64xf32>
    %165 = arith.addf %163, %164 : vector<8x64xf32>
    %166 = math.tanh %165 : vector<8x64xf32>
    %167 = arith.mulf %162, %166 : vector<8x64xf32>
    %c4_i32_34 = arith.constant 4 : i32
    %c3_i32_35 = arith.constant 3 : i32
    %168 = vector.broadcast %c4_i32_34 : i32 to vector<8x64xi32>
    %169 = vector.broadcast %c3_i32_35 : i32 to vector<8x64xi32>
    %170 = arith.select %6, %168, %169 : vector<8x64xi1>, vector<8x64xi32>
    %171 = arith.cmpi slt, %170, %3 : vector<8x64xi32>
    %172 = arith.select %171, %167, %141 : vector<8x64xi1>, vector<8x64xf32>
    %173 = arith.select %171, %165, %142 : vector<8x64xi1>, vector<8x64xf32>
    %cst_36 = arith.constant 0.000000e+00 : f32
    %174 = vector.broadcast %cst_36 : f32 to vector<8x64xf32>
    %175 = arith.select %171, %167, %174 : vector<8x64xi1>, vector<8x64xf32>
    %176 = arith.maximumf %145, %175 : vector<8x64xf32>
    %177 = arith.truncf %172 : vector<8x64xf32> to vector<8x64xbf16>
    %cst_37 = arith.constant dense<0.000000e+00> : vector<8x256xf32>
    %178 = tpu.matmul %177, %0, %cst_37 {dimension_numbers = #tpu.dot_dimension_numbers<[1], [0], [0], [1], [0, 0, 1, 1], [], []>} : vector<8x64xbf16>, vector<64x256xbf16>, vector<8x256xf32> -> vector<8x256xf32>
    %c5 = arith.constant 5 : index
    %c0_38 = arith.constant 0 : index
    %c0_39 = arith.constant 0 : index
    %179 = vector.load %arg0[%c5, %c0_38, %c0_39] : memref<8x8x256xf32, #tpu.memory_space<vmem>>, vector<1x8x256xf32>
    %180 = vector.shape_cast %179 : vector<1x8x256xf32> to vector<8x256xf32>
    %181 = arith.addf %180, %178 : vector<8x256xf32>
    %182 = arith.mulf %181, %15 : vector<8x256xf32>
    %183 = arith.negf %182 : vector<8x256xf32>
    %184 = math.exp %183 : vector<8x256xf32>
    %cst_40 = arith.constant 1.000000e+00 : f32
    %185 = vector.broadcast %cst_40 : f32 to vector<8x256xf32>
    %186 = arith.addf %185, %184 : vector<8x256xf32>
    %187 = arith.divf %185, %186 : vector<8x256xf32>
    %188 = arith.mulf %187, %15 : vector<8x256xf32>
    %189 = arith.subf %188, %18 : vector<8x256xf32>
    %190 = vector.extract_strided_slice %189 {offsets = [0, 0], sizes = [8, 64], strides = [1, 1]} : vector<8x256xf32> to vector<8x64xf32>
    %191 = vector.extract_strided_slice %189 {offsets = [0, 64], sizes = [8, 64], strides = [1, 1]} : vector<8x256xf32> to vector<8x64xf32>
    %192 = vector.extract_strided_slice %189 {offsets = [0, 128], sizes = [8, 64], strides = [1, 1]} : vector<8x256xf32> to vector<8x64xf32>
    %193 = vector.extract_strided_slice %189 {offsets = [0, 192], sizes = [8, 64], strides = [1, 1]} : vector<8x256xf32> to vector<8x64xf32>
    %194 = arith.mulf %191, %173 : vector<8x64xf32>
    %195 = arith.mulf %190, %192 : vector<8x64xf32>
    %196 = arith.addf %194, %195 : vector<8x64xf32>
    %197 = math.tanh %196 : vector<8x64xf32>
    %198 = arith.mulf %193, %197 : vector<8x64xf32>
    %c5_i32_41 = arith.constant 5 : i32
    %c2_i32_42 = arith.constant 2 : i32
    %199 = vector.broadcast %c5_i32_41 : i32 to vector<8x64xi32>
    %200 = vector.broadcast %c2_i32_42 : i32 to vector<8x64xi32>
    %201 = arith.select %6, %199, %200 : vector<8x64xi1>, vector<8x64xi32>
    %202 = arith.cmpi slt, %201, %3 : vector<8x64xi32>
    %203 = arith.select %202, %198, %172 : vector<8x64xi1>, vector<8x64xf32>
    %204 = arith.select %202, %196, %173 : vector<8x64xi1>, vector<8x64xf32>
    %cst_43 = arith.constant 0.000000e+00 : f32
    %205 = vector.broadcast %cst_43 : f32 to vector<8x64xf32>
    %206 = arith.select %202, %198, %205 : vector<8x64xi1>, vector<8x64xf32>
    %207 = arith.maximumf %176, %206 : vector<8x64xf32>
    %208 = arith.truncf %203 : vector<8x64xf32> to vector<8x64xbf16>
    %cst_44 = arith.constant dense<0.000000e+00> : vector<8x256xf32>
    %209 = tpu.matmul %208, %0, %cst_44 {dimension_numbers = #tpu.dot_dimension_numbers<[1], [0], [0], [1], [0, 0, 1, 1], [], []>} : vector<8x64xbf16>, vector<64x256xbf16>, vector<8x256xf32> -> vector<8x256xf32>
    %c6 = arith.constant 6 : index
    %c0_45 = arith.constant 0 : index
    %c0_46 = arith.constant 0 : index
    %210 = vector.load %arg0[%c6, %c0_45, %c0_46] : memref<8x8x256xf32, #tpu.memory_space<vmem>>, vector<1x8x256xf32>
    %211 = vector.shape_cast %210 : vector<1x8x256xf32> to vector<8x256xf32>
    %212 = arith.addf %211, %209 : vector<8x256xf32>
    %213 = arith.mulf %212, %15 : vector<8x256xf32>
    %214 = arith.negf %213 : vector<8x256xf32>
    %215 = math.exp %214 : vector<8x256xf32>
    %cst_47 = arith.constant 1.000000e+00 : f32
    %216 = vector.broadcast %cst_47 : f32 to vector<8x256xf32>
    %217 = arith.addf %216, %215 : vector<8x256xf32>
    %218 = arith.divf %216, %217 : vector<8x256xf32>
    %219 = arith.mulf %218, %15 : vector<8x256xf32>
    %220 = arith.subf %219, %18 : vector<8x256xf32>
    %221 = vector.extract_strided_slice %220 {offsets = [0, 0], sizes = [8, 64], strides = [1, 1]} : vector<8x256xf32> to vector<8x64xf32>
    %222 = vector.extract_strided_slice %220 {offsets = [0, 64], sizes = [8, 64], strides = [1, 1]} : vector<8x256xf32> to vector<8x64xf32>
    %223 = vector.extract_strided_slice %220 {offsets = [0, 128], sizes = [8, 64], strides = [1, 1]} : vector<8x256xf32> to vector<8x64xf32>
    %224 = vector.extract_strided_slice %220 {offsets = [0, 192], sizes = [8, 64], strides = [1, 1]} : vector<8x256xf32> to vector<8x64xf32>
    %225 = arith.mulf %222, %204 : vector<8x64xf32>
    %226 = arith.mulf %221, %223 : vector<8x64xf32>
    %227 = arith.addf %225, %226 : vector<8x64xf32>
    %228 = math.tanh %227 : vector<8x64xf32>
    %229 = arith.mulf %224, %228 : vector<8x64xf32>
    %c6_i32_48 = arith.constant 6 : i32
    %c1_i32_49 = arith.constant 1 : i32
    %230 = vector.broadcast %c6_i32_48 : i32 to vector<8x64xi32>
    %231 = vector.broadcast %c1_i32_49 : i32 to vector<8x64xi32>
    %232 = arith.select %6, %230, %231 : vector<8x64xi1>, vector<8x64xi32>
    %233 = arith.cmpi slt, %232, %3 : vector<8x64xi32>
    %234 = arith.select %233, %229, %203 : vector<8x64xi1>, vector<8x64xf32>
    %235 = arith.select %233, %227, %204 : vector<8x64xi1>, vector<8x64xf32>
    %cst_50 = arith.constant 0.000000e+00 : f32
    %236 = vector.broadcast %cst_50 : f32 to vector<8x64xf32>
    %237 = arith.select %233, %229, %236 : vector<8x64xi1>, vector<8x64xf32>
    %238 = arith.maximumf %207, %237 : vector<8x64xf32>
    %239 = arith.truncf %234 : vector<8x64xf32> to vector<8x64xbf16>
    %cst_51 = arith.constant dense<0.000000e+00> : vector<8x256xf32>
    %240 = tpu.matmul %239, %0, %cst_51 {dimension_numbers = #tpu.dot_dimension_numbers<[1], [0], [0], [1], [0, 0, 1, 1], [], []>} : vector<8x64xbf16>, vector<64x256xbf16>, vector<8x256xf32> -> vector<8x256xf32>
    %c7 = arith.constant 7 : index
    %c0_52 = arith.constant 0 : index
    %c0_53 = arith.constant 0 : index
    %241 = vector.load %arg0[%c7, %c0_52, %c0_53] : memref<8x8x256xf32, #tpu.memory_space<vmem>>, vector<1x8x256xf32>
    %242 = vector.shape_cast %241 : vector<1x8x256xf32> to vector<8x256xf32>
    %243 = arith.addf %242, %240 : vector<8x256xf32>
    %244 = arith.mulf %243, %15 : vector<8x256xf32>
    %245 = arith.negf %244 : vector<8x256xf32>
    %246 = math.exp %245 : vector<8x256xf32>
    %cst_54 = arith.constant 1.000000e+00 : f32
    %247 = vector.broadcast %cst_54 : f32 to vector<8x256xf32>
    %248 = arith.addf %247, %246 : vector<8x256xf32>
    %249 = arith.divf %247, %248 : vector<8x256xf32>
    %250 = arith.mulf %249, %15 : vector<8x256xf32>
    %251 = arith.subf %250, %18 : vector<8x256xf32>
    %252 = vector.extract_strided_slice %251 {offsets = [0, 0], sizes = [8, 64], strides = [1, 1]} : vector<8x256xf32> to vector<8x64xf32>
    %253 = vector.extract_strided_slice %251 {offsets = [0, 64], sizes = [8, 64], strides = [1, 1]} : vector<8x256xf32> to vector<8x64xf32>
    %254 = vector.extract_strided_slice %251 {offsets = [0, 128], sizes = [8, 64], strides = [1, 1]} : vector<8x256xf32> to vector<8x64xf32>
    %255 = vector.extract_strided_slice %251 {offsets = [0, 192], sizes = [8, 64], strides = [1, 1]} : vector<8x256xf32> to vector<8x64xf32>
    %256 = arith.mulf %253, %235 : vector<8x64xf32>
    %257 = arith.mulf %252, %254 : vector<8x64xf32>
    %258 = arith.addf %256, %257 : vector<8x64xf32>
    %259 = math.tanh %258 : vector<8x64xf32>
    %260 = arith.mulf %255, %259 : vector<8x64xf32>
    %c7_i32_55 = arith.constant 7 : i32
    %c0_i32_56 = arith.constant 0 : i32
    %261 = vector.broadcast %c7_i32_55 : i32 to vector<8x64xi32>
    %262 = vector.broadcast %c0_i32_56 : i32 to vector<8x64xi32>
    %263 = arith.select %6, %261, %262 : vector<8x64xi1>, vector<8x64xi32>
    %264 = arith.cmpi slt, %263, %3 : vector<8x64xi32>
    %cst_57 = arith.constant 0.000000e+00 : f32
    %265 = vector.broadcast %cst_57 : f32 to vector<8x64xf32>
    %266 = arith.select %264, %260, %265 : vector<8x64xi1>, vector<8x64xf32>
    %267 = arith.maximumf %238, %266 : vector<8x64xf32>
    %268 = arith.truncf %267 : vector<8x64xf32> to vector<8x64xbf16>
    %c0_58 = arith.constant 0 : index
    %c0_59 = arith.constant 0 : index
    %269 = vector.load %arg4[%c0_58, %c0_59] : memref<64x128xbf16, #tpu.memory_space<vmem>>, vector<64x128xbf16>
    %cst_60 = arith.constant dense<0.000000e+00> : vector<8x128xf32>
    %270 = tpu.matmul %268, %269, %cst_60 {dimension_numbers = #tpu.dot_dimension_numbers<[1], [0], [0], [1], [0, 0, 1, 1], [], []>} : vector<8x64xbf16>, vector<64x128xbf16>, vector<8x128xf32> -> vector<8x128xf32>
    %c0_61 = arith.constant 0 : index
    %c0_62 = arith.constant 0 : index
    %271 = vector.load %arg5[%c0_61, %c0_62] : memref<1x128xf32, #tpu.memory_space<vmem>>, vector<1x128xf32>
    %272 = vector.broadcast %271 : vector<1x128xf32> to vector<8x128xf32>
    %273 = arith.addf %270, %272 : vector<8x128xf32>
    %cst_63 = arith.constant 0.000000e+00 : f32
    %274 = vector.broadcast %cst_63 : f32 to vector<8x128xf32>
    %275 = arith.maximumf %273, %274 : vector<8x128xf32>
    %276 = arith.truncf %275 : vector<8x128xf32> to vector<8x128xbf16>
    %c0_64 = arith.constant 0 : index
    %c0_65 = arith.constant 0 : index
    %277 = vector.load %arg6[%c0_64, %c0_65] : memref<128x64xbf16, #tpu.memory_space<vmem>>, vector<128x64xbf16>
    %cst_66 = arith.constant dense<0.000000e+00> : vector<8x64xf32>
    %278 = tpu.matmul %276, %277, %cst_66 {dimension_numbers = #tpu.dot_dimension_numbers<[1], [0], [0], [1], [0, 0, 1, 1], [], []>} : vector<8x128xbf16>, vector<128x64xbf16>, vector<8x64xf32> -> vector<8x64xf32>
    %c0_67 = arith.constant 0 : index
    %c0_68 = arith.constant 0 : index
    %279 = vector.load %arg2[%c0_67, %c0_68] : memref<8x4xf32, #tpu.memory_space<vmem>>, vector<8x4xf32>
    %280 = arith.truncf %279 : vector<8x4xf32> to vector<8x4xbf16>
    %c0_69 = arith.constant 0 : index
    %c0_70 = arith.constant 0 : index
    %281 = vector.load %arg7[%c0_69, %c0_70] : memref<4x64xbf16, #tpu.memory_space<vmem>>, vector<4x64xbf16>
    %cst_71 = arith.constant dense<0.000000e+00> : vector<8x64xf32>
    %282 = tpu.matmul %280, %281, %cst_71 {dimension_numbers = #tpu.dot_dimension_numbers<[1], [0], [0], [1], [0, 0, 1, 1], [], []>} : vector<8x4xbf16>, vector<4x64xbf16>, vector<8x64xf32> -> vector<8x64xf32>
    %283 = arith.addf %278, %282 : vector<8x64xf32>
    %c0_72 = arith.constant 0 : index
    %c0_73 = arith.constant 0 : index
    %284 = vector.load %arg8[%c0_72, %c0_73] : memref<1x64xf32, #tpu.memory_space<vmem>>, vector<1x64xf32>
    %285 = vector.broadcast %284 : vector<1x64xf32> to vector<8x64xf32>
    %286 = arith.addf %283, %285 : vector<8x64xf32>
    %cst_74 = arith.constant 0.000000e+00 : f32
    %287 = vector.broadcast %cst_74 : f32 to vector<8x64xf32>
    %288 = arith.maximumf %286, %287 : vector<8x64xf32>
    %289 = arith.truncf %288 : vector<8x64xf32> to vector<8x64xbf16>
    %c0_75 = arith.constant 0 : index
    %c0_76 = arith.constant 0 : index
    %290 = vector.load %arg9[%c0_75, %c0_76] : memref<64x128xbf16, #tpu.memory_space<vmem>>, vector<64x128xbf16>
    %cst_77 = arith.constant dense<0.000000e+00> : vector<8x128xf32>
    %291 = tpu.matmul %289, %290, %cst_77 {dimension_numbers = #tpu.dot_dimension_numbers<[1], [0], [0], [1], [0, 0, 1, 1], [], []>} : vector<8x64xbf16>, vector<64x128xbf16>, vector<8x128xf32> -> vector<8x128xf32>
    %c0_78 = arith.constant 0 : index
    %c0_79 = arith.constant 0 : index
    %292 = vector.load %arg10[%c0_78, %c0_79] : memref<1x128xf32, #tpu.memory_space<vmem>>, vector<1x128xf32>
    %293 = vector.broadcast %292 : vector<1x128xf32> to vector<8x128xf32>
    %294 = arith.addf %291, %293 : vector<8x128xf32>
    %c0_80 = arith.constant 0 : index
    %c0_81 = arith.constant 0 : index
    %295 = vector.load %arg11[%c0_80, %c0_81] : memref<8x128xf32, #tpu.memory_space<vmem>>, vector<8x128xf32>
    tpu.vector_store %arg11[%c0_80, %c0_81], %294 {strides = array<i32>} : memref<8x128xf32, #tpu.memory_space<vmem>>, vector<8x128xf32>,
    return
  }
}

</mosaic_0001>

<bundles_post_ra>
// kernel: sequence_model_forward.1
= control target key start
LH: loop header
LB: loop body
LE: loop exit
PB: predicated region body
PF: predicated region fallthrough
CT: control target
= control target key end

     0   :  { %v1448_v1 = vmov 0   ;;  %v51_v9 = vlaneseq  ;;  %v1449_v16 = vmov 1.0   ;;  %v1450_v30 = vmov 0.0   ;;  %s1451_s17 = smov 64   ;;  %s1898_s3 = inlined_call_operand.vmem [shape: bf16[64,256], index: 3, kind: input, shape index: {}]   ;;  %s1899_s0 = inlined_call_operand.vmem [shape: f32[8,8,256], index: 0, kind: input, shape index: {}]   ;;  %s1900_s1 = inlined_call_operand.vmem [shape: s32[8,1], index: 1, kind: input, shape index: {}]   ;;  %s1901_s4 = inlined_call_operand.vmem [shape: bf16[64,128], index: 4, kind: input, shape index: {}]   ;;  %s1902_s7 = inlined_call_operand.vmem [shape: bf16[4,64], index: 7, kind: input, shape index: {}]   ;;  %s1903_s2 = inlined_call_operand.vmem [shape: f32[8,4], index: 2, kind: input, shape index: {}]   ;;  %s1904_s6 = inlined_call_operand.vmem [shape: bf16[128,64], index: 6, kind: input, shape index: {}]   ;;  %s1905_s9 = inlined_call_operand.vmem [shape: bf16[64,128], index: 9, kind: input, shape index: {}]   ;;  %s1906_s5 = inlined_call_operand.vmem [shape: f32[1,128], index: 5, kind: input, shape index: {}]   ;;  %s1907_s8 = inlined_call_operand.vmem [shape: f32[1,64], index: 8, kind: input, shape index: {}]   ;;  %s1908_s10 = inlined_call_operand.vmem [shape: f32[1,128], index: 10, kind: input, shape index: {}]   ;;  %s1909_s11 = inlined_call_operand.vmem [shape: f32[8,128], index: 11, kind: output, shape index: {}]  }
   0x1   :  { %v1523_v0 = vld [vmem:[%s1898_s3 + $0x4] ss:$8 sps:$4 sm:$0xff]   ;;  %141 = vmatprep.mubr.bf16.mxu0 %v1448_v1  ;;  %1339 = vset.pattern.permute.xlu0 %v1448_v1  ;;  %v1530_v2 = vld [vmem:[%s1898_s3] ss:$8 sps:$4 sm:$0xff]   ;;  %v1537_v3 = vld [vmem:[%s1898_s3 + $0x14] ss:$8 sps:$4 sm:$0xff]  }
   0x2   :  { %229 = vmatprep.mubr.bf16.mxu1 %v1448_v1  ;;  %109 = vmatprep.subr.bf16.mxu0 %v1523_v0  ;;  %v1544_v4 = vld [vmem:[%s1898_s3 + $0x10] ss:$8 sps:$4 sm:$0xff]   ;;  %v1551_v5 = vld [vmem:[%s1898_s3 + $0x24] ss:$8 sps:$4 sm:$0xff]   ;;  %v1558_v6 = vld [vmem:[%s1898_s3 + $0x20] ss:$8 sps:$4 sm:$0xff]  }
   0x3   :  { %197 = vmatprep.subr.bf16.mxu1 %v1523_v0  ;;  %110 = vmatpush1.bf16.msra.mxu0 %v1530_v2  ;;  %v1565_v7 = vld [vmem:[%s1898_s3 + $0x34] ss:$8 sps:$4 sm:$0xff]   ;;  %v1572_v8 = vld [vmem:[%s1898_s3 + $0x30] ss:$8 sps:$4 sm:$0xff]   ;;  %v1591_v10 = vand.u32 127, %v51_v9  ;;  %v150_v12 = vld [vmem:[%s1899_s0] sm:$0xff] }
   0x4   :  { %198 = vmatpush1.bf16.msra.mxu1 %v1530_v2  ;;  %111 = vmatprep.subr.bf16.mxu0 %v1537_v3  ;;  %v151_v13 = vld [vmem:[%s1899_s0 + $0x8] sm:$0xff]  ;;  %v47_v36 = vld [vmem:[%s1900_s1] sm:$0xff]  ;;  %v1452_v43 = vmov 7   ;;  %vm105_vm3 = vcmask 523264   ;;  %v1200_v50 = vld [vmem:[%s1899_s0 + $0x10] sm:$0xff]  ;;  %vm1459_vm10 = vmmov 0  }
   0x5   :  { %199 = vmatprep.subr.bf16.mxu1 %v1537_v3  ;;  %v54_v11 = vadd.s32 128, %v1591_v10  ;;  %vm53_vm1 = vcmp.lt.s32.totalorder %v1591_v10, 32  ;;  %v1201_v51 = vld [vmem:[%s1899_s0 + $0x18] sm:$0xff]  ;;  %vm960_vm11 = vcmask 1041408   ;;  %vm956_vm12 = vcmask 31744  }
   0x6   :  { %v181_v44 = vsel %vm53_vm1, 0, %v1452_v43 }
   0x7   :  { %112 = vmatpush1.bf16.msra.mxu0 %v1544_v4  ;;  %vm58_vm0 = vcmp.lt.s32.totalorder %v54_v11, 192 }
   0x8   :  { %200 = vmatpush1.bf16.msra.mxu1 %v1544_v4  ;;  %113 = vmatprep.subr.bf16.mxu0 %v1551_v5  ;;  %v1601_v17 = vsel %vm58_vm0, 2.0, %v1449_v16  ;;  %v1606_v31 = vsel %vm58_vm0, 1.0, %v1450_v30 }
   0x9   :  { %201 = vmatprep.subr.bf16.mxu1 %v1551_v5 }
   0xb   :  { %114 = vmatpush1.bf16.msra.mxu0 %v1558_v6 }
   0xc   :  { %202 = vmatpush1.bf16.msra.mxu1 %v1558_v6  ;;  %115 = vmatprep.subr.bf16.mxu0 %v1565_v7 }
   0xd   :  { %203 = vmatprep.subr.bf16.mxu1 %v1565_v7 }
   0xf   :  { %116 = vmatpush1.bf16.msra.mxu0 %v1572_v8 }
  0x10   :  { %204 = vmatpush1.bf16.msra.mxu1 %v1572_v8  ;;  %292 = vmatprep.subr.bf16.mxu0 %v1523_v0 }
  0x11   :  { %387 = vmatprep.subr.bf16.mxu1 %v1523_v0 }
  0x12   :  { %142 = vmatmul.mubr.bf16.vlgmr.msra.gmra.mrb[0].mxu0 %v1448_v1 }
  0x13   :  { %293 = vmatpush1.bf16.msra.mxu0 %v1530_v2  ;;  %324 = vmatprep.mubr.bf16.mxu0 %v1448_v1 }
  0x14   :  { %294 = vmatprep.subr.bf16.mxu0 %v1537_v3 }
  0x17   :  { %295 = vmatpush1.bf16.msra.mxu0 %v1544_v4 }
  0x18   :  { %296 = vmatprep.subr.bf16.mxu0 %v1551_v5 }
  0x1b   :  { %297 = vmatpush1.bf16.msra.mxu0 %v1558_v6 }
  0x1c   :  { %298 = vmatprep.subr.bf16.mxu0 %v1565_v7 }
  0x1f   :  { %299 = vmatpush1.bf16.msra.mxu0 %v1572_v8 }
  0x20   :  { %482 = vmatprep.subr.bf16.mxu0 %v1523_v0 }
  0xe5   :  { %v143_v14 = vpop.f32.mrb[0].mxu0 }
  0xe6   :  { %v152_v15 = vadd.f32 %v150_v12, %v143_v14  ;;  %v145_v18 = vpop.f32.mrb[1].mxu0 }
  0xe7   :  { %v153_v19 = vadd.f32 %v151_v13, %v145_v18  ;;  %v147_v20 = vpop.f32.mrb[2].mxu0 }
  0xe8   :  { %v1197_v21 = vmul.f32 -1.442695, %v152_v15  ;;  %v148_v22 = vpop.f32.mrb[3].mxu0 }
  0xe9   :  { %v155_v23 = vmul.f32 %v153_v19, %v1601_v17 }
  0xea   :  { %1368 = vpow2.f32 %v1197_v21 }
  0xeb   :  { %v1198_v24 = vmul.f32 -1.442695, %v155_v23  ;;  %v1453_v23 = vmov 6  }
  0xed   :  { %1370 = vpow2.f32 %v1198_v24  ;;  %v274_v24 = vsel %vm53_vm1, 1, %v1453_v23 }
  0xf4   :  { %v1369_v25 = vpop.eup %1368 }
  0xf5   :  { %v162_v28 = vadd.f32 1.0, %v1369_v25 }
  0xf7   :  { %v1371_v26 = vpop.eup %1370 }
  0xf8   :  { %v163_v27 = vadd.f32 1.0, %v1371_v26 }
  0xfa   :  { %1372 = vrcp.f32 %v163_v27 }
  0xfb   :  { %1374 = vrcp.f32 %v162_v28 }
 0x104   :  { %v1373_v29 = vpop.eup %1372 }
 0x105   :  { %v169_v32 = vmul.f32 %v1373_v29, %v1601_v17  ;;  %v1375_v34 = vpop.eup %1374 }
 0x106   :  { %v172_v37 = vmul.f32 0.0, %v1375_v34 }
 0x107   :  { %v171_v33 = vsub.f32 %v169_v32, %v1606_v31  ;;  %v1205_v32 = vld [vmem:[%s1899_s0 + $0x20] sm:$0xff] }
 0x109   :  { %v173_v35 = vmul.f32 %v1375_v34, %v171_v33 }
 0x10b   :  { %175 = vrot.lane.b32.xlu0 %v173_v35, %s1451_s17 }
 0x10f   :  { %49 = vperm.xlu0 %1339, %v47_v36  }
 0x17d   :  { %v176_v38 = vpop.permute.xlu0 %175 }
 0x17e   :  { %v178_v39 = vadd.f32 %v176_v38, %v172_v37 }
 0x180   :  { %1376 = vtanh.f32 %v178_v39 }
 0x18a   :  { %v1377_v40 = vpop.eup %1376 }
 0x18b   :  { %v180_v41 = vmul.f32 %v1377_v40, %v171_v33  ;;  %v1206_v33 = vld [vmem:[%s1899_s0 + $0x28] sm:$0xff] }
 0x18d   :  { %184 = vrot.lane.b32.xlu1 %v180_v41, %s1451_s17 }
 0x18e   :  { %v1617_v42 = vpop.permute.xlu0 %49 }
 0x18f   :  { %vm182_vm2 = vcmp.lt.s32.totalorder %v181_v44, %v1617_v42  ;;  %vm275_vm4 = vcmp.lt.s32.totalorder %v274_v24, %v1617_v42 }
 0x191   :  { %189 = vrot.lane.b32.xlu1 %v178_v39, %s1451_s17 }
 0x1ff   :  { %v185_v45 = vpop.permute.xlu1 %184 }
 0x200   :  { %v1622_v46 = vsel %vm182_vm2, %v185_v45, 0.0 }
 0x201   :  { %v193_v47 = vpack.c.bf16 %v1622_v46, %v1622_v46 }
 0x203   :  { %1199 = vmatmul.mubr.msk.bf16.vlgmr.msra.gmra.mrb[0].mxu1 %vm105_vm3, %v193_v47  ;;  %v190_v48 = vpop.permute.xlu1 %189 }
 0x204   :  { %v192_v49 = vsel %vm182_vm2, %v190_v48, 0.0  ;;  %388 = vmatpush1.bf16.msra.mxu1 %v1530_v2  ;;  %419 = vmatprep.mubr.bf16.mxu1 %v1448_v1 }
 0x205   :  { %262 = vrot.lane.b32.xlu1 %v192_v49, %s1451_s17  ;;  %389 = vmatprep.subr.bf16.mxu1 %v1537_v3 }
 0x208   :  { %390 = vmatpush1.bf16.msra.mxu1 %v1544_v4 }
 0x209   :  { %391 = vmatprep.subr.bf16.mxu1 %v1551_v5 }
 0x20c   :  { %392 = vmatpush1.bf16.msra.mxu1 %v1558_v6 }
 0x20d   :  { %393 = vmatprep.subr.bf16.mxu1 %v1565_v7 }
 0x210   :  { %394 = vmatpush1.bf16.msra.mxu1 %v1572_v8 }
 0x211   :  { %577 = vmatprep.subr.bf16.mxu1 %v1523_v0 }
 0x277   :  { %v263_v16 = vpop.permute.xlu1 %262 }
 0x2d6   :  { %v231_v52 = vpop.f32.mrb[0].mxu1 }
 0x2d7   :  { %v241_v53 = vadd.f32 %v1200_v50, %v231_v52  ;;  %v233_v54 = vpop.f32.mrb[1].mxu1 }
 0x2d8   :  { %v242_v55 = vadd.f32 %v1201_v51, %v233_v54  ;;  %v235_v56 = vpop.f32.mrb[2].mxu1 }
 0x2d9   :  { %v1202_v57 = vmul.f32 -1.442695, %v241_v53  ;;  %v236_v58 = vpop.f32.mrb[3].mxu1 }
 0x2da   :  { %v244_v59 = vmul.f32 %v242_v55, %v1601_v17 }
 0x2db   :  { %1378 = vpow2.f32 %v1202_v57 }
 0x2dc   :  { %v1203_v60 = vmul.f32 -1.442695, %v244_v59 }
 0x2de   :  { %1380 = vpow2.f32 %v1203_v60  ;;  %v1454_v60 = vmov 5  }
 0x2e5   :  { %v1379_v61 = vpop.eup %1378 }
 0x2e6   :  { %v251_v9 = vadd.f32 1.0, %v1379_v61  ;;  %v369_v61 = vsel %vm53_vm1, 2, %v1454_v60 }
 0x2e7   :  { %vm370_vm5 = vcmp.lt.s32.totalorder %v369_v61, %v1617_v42 }
 0x2e8   :  { %v1381_v62 = vpop.eup %1380 }
 0x2e9   :  { %v252_v63 = vadd.f32 1.0, %v1381_v62 }
 0x2eb   :  { %1382 = vrcp.f32 %v252_v63 }
 0x2ec   :  { %1384 = vrcp.f32 %v251_v9 }
 0x2f5   :  { %v1383_v11 = vpop.eup %1382 }
 0x2f6   :  { %v258_v12 = vmul.f32 %v1383_v11, %v1601_v17  ;;  %v1385_v14 = vpop.eup %1384 }
 0x2f7   :  { %v265_v18 = vmul.f32 %v1385_v14, %v263_v16 }
 0x2f8   :  { %v260_v13 = vsub.f32 %v258_v12, %v1606_v31 }
 0x2fa   :  { %v266_v15 = vmul.f32 %v1385_v14, %v260_v13 }
 0x2fc   :  { %268 = vrot.lane.b32.xlu0 %v266_v15, %s1451_s17 }
 0x36e   :  { %v269_v19 = vpop.permute.xlu0 %268 }
 0x36f   :  { %v271_v20 = vadd.f32 %v269_v19, %v265_v18  ;;  %v1211_v18 = vld [vmem:[%s1899_s0 + $0x38] sm:$0xff] }
 0x371   :  { %1386 = vtanh.f32 %v271_v20  ;;  %282 = vrot.lane.b32.xlu0 %v271_v20, %s1451_s17 }
 0x37b   :  { %v1387_v21 = vpop.eup %1386 }
 0x37c   :  { %v273_v22 = vmul.f32 %v1387_v21, %v260_v13 }
 0x37e   :  { %277 = vrot.lane.b32.xlu1 %v273_v22, %s1451_s17 }
 0x3e3   :  { %v283_v25 = vpop.permute.xlu0 %282 }
 0x3e4   :  { %v285_v26 = vsel %vm275_vm4, %v283_v25, %v192_v49 }
 0x3e5   :  { %357 = vrot.lane.b32.xlu1 %v285_v26, %s1451_s17 }
 0x3f0   :  { %v278_v27 = vpop.permute.xlu1 %277 }
 0x3f1   :  { %v280_v28 = vsel %vm275_vm4, %v278_v27, %v1622_v46  ;;  %v286_v9 = vsel %vm275_vm4, %v278_v27, 0.0 }
 0x3f2   :  { %v288_v29 = vpack.c.bf16 %v280_v28, %v280_v28  ;;  %v287_v11 = vmax.f32 %v1622_v46, %v286_v9  ;;  %v1210_v46 = vld [vmem:[%s1899_s0 + $0x30] sm:$0xff] }
 0x3f4   :  { %1204 = vmatmul.mubr.msk.bf16.vlgmr.msra.gmra.mrb[4].mxu0 %vm105_vm3, %v288_v29 }
 0x3f5   :  { %483 = vmatpush1.bf16.msra.mxu0 %v1530_v2  ;;  %514 = vmatprep.mubr.bf16.mxu0 %v1448_v1 }
 0x3f6   :  { %484 = vmatprep.subr.bf16.mxu0 %v1537_v3 }
 0x3f9   :  { %485 = vmatpush1.bf16.msra.mxu0 %v1544_v4 }
 0x3fa   :  { %486 = vmatprep.subr.bf16.mxu0 %v1551_v5 }
 0x3fd   :  { %487 = vmatpush1.bf16.msra.mxu0 %v1558_v6 }
 0x3fe   :  { %488 = vmatprep.subr.bf16.mxu0 %v1565_v7 }
 0x401   :  { %489 = vmatpush1.bf16.msra.mxu0 %v1572_v8 }
 0x402   :  { %672 = vmatprep.subr.bf16.mxu0 %v1523_v0 }
 0x457   :  { %v358_v54 = vpop.permute.xlu1 %357 }
 0x4c7   :  { %v326_v34 = vpop.f32.mrb[4].mxu0 }
 0x4c8   :  { %v336_v35 = vadd.f32 %v1205_v32, %v326_v34  ;;  %v328_v36 = vpop.f32.mrb[5].mxu0 }
 0x4c9   :  { %v337_v37 = vadd.f32 %v1206_v33, %v328_v36  ;;  %v330_v38 = vpop.f32.mrb[6].mxu0 }
 0x4ca   :  { %v1207_v39 = vmul.f32 -1.442695, %v336_v35  ;;  %v331_v40 = vpop.f32.mrb[7].mxu0 }
 0x4cb   :  { %v339_v41 = vmul.f32 %v337_v37, %v1601_v17 }
 0x4cc   :  { %1388 = vpow2.f32 %v1207_v39 }
 0x4cd   :  { %v1208_v43 = vmul.f32 -1.442695, %v339_v41 }
 0x4cf   :  { %1390 = vpow2.f32 %v1208_v43 }
 0x4d6   :  { %v1389_v44 = vpop.eup %1388 }
 0x4d7   :  { %v346_v48 = vadd.f32 1.0, %v1389_v44 }
 0x4d9   :  { %v1391_v45 = vpop.eup %1390 }
 0x4da   :  { %v347_v47 = vadd.f32 1.0, %v1391_v45  ;;  %v1455_v45 = vmov 4  }
 0x4dc   :  { %1392 = vrcp.f32 %v347_v47  ;;  %v464_v47 = vsel %vm53_vm1, 3, %v1455_v45 }
 0x4dd   :  { %1394 = vrcp.f32 %v346_v48  ;;  %vm465_vm6 = vcmp.lt.s32.totalorder %v464_v47, %v1617_v42 }
 0x4e6   :  { %v1393_v49 = vpop.eup %1392 }
 0x4e7   :  { %v353_v50 = vmul.f32 %v1393_v49, %v1601_v17  ;;  %v1395_v52 = vpop.eup %1394 }
 0x4e8   :  { %v360_v55 = vmul.f32 %v1395_v52, %v358_v54 }
 0x4e9   :  { %v355_v51 = vsub.f32 %v353_v50, %v1606_v31 }
 0x4eb   :  { %v361_v53 = vmul.f32 %v1395_v52, %v355_v51 }
 0x4ed   :  { %363 = vrot.lane.b32.xlu0 %v361_v53, %s1451_s17 }
 0x55f   :  { %v364_v56 = vpop.permute.xlu0 %363 }
 0x560   :  { %v366_v57 = vadd.f32 %v364_v56, %v360_v55  ;;  %v1215_v55 = vld [vmem:[%s1899_s0 + $0x40] sm:$0xff]  ;;  %v1216_v56 = vld [vmem:[%s1899_s0 + $0x48] sm:$0xff] }
 0x562   :  { %1396 = vtanh.f32 %v366_v57  ;;  %377 = vrot.lane.b32.xlu0 %v366_v57, %s1451_s17 }
 0x56c   :  { %v1397_v58 = vpop.eup %1396 }
 0x56d   :  { %v368_v59 = vmul.f32 %v1397_v58, %v355_v51 }
 0x56f   :  { %372 = vrot.lane.b32.xlu1 %v368_v59, %s1451_s17 }
 0x5d4   :  { %v378_v62 = vpop.permute.xlu0 %377 }
 0x5d5   :  { %v380_v63 = vsel %vm370_vm5, %v378_v62, %v285_v26 }
 0x5d6   :  { %452 = vrot.lane.b32.xlu1 %v380_v63, %s1451_s17 }
 0x5e1   :  { %v373_v12 = vpop.permute.xlu1 %372 }
 0x5e2   :  { %v375_v13 = vsel %vm370_vm5, %v373_v12, %v280_v28  ;;  %v381_v14 = vsel %vm370_vm5, %v373_v12, 0.0 }
 0x5e3   :  { %v1687_v15 = vmax.f32 %v287_v11, %v381_v14  ;;  %v383_v16 = vpack.c.bf16 %v375_v13, %v375_v13 }
 0x5e5   :  { %1209 = vmatmul.mubr.msk.bf16.vlgmr.msra.gmra.mrb[4].mxu1 %vm105_vm3, %v383_v16 }
 0x5e6   :  { %578 = vmatpush1.bf16.msra.mxu1 %v1530_v2  ;;  %609 = vmatprep.mubr.bf16.mxu1 %v1448_v1 }
 0x5e7   :  { %579 = vmatprep.subr.bf16.mxu1 %v1537_v3 }
 0x5ea   :  { %580 = vmatpush1.bf16.msra.mxu1 %v1544_v4 }
 0x5eb   :  { %581 = vmatprep.subr.bf16.mxu1 %v1551_v5 }
 0x5ee   :  { %582 = vmatpush1.bf16.msra.mxu1 %v1558_v6 }
 0x5ef   :  { %583 = vmatprep.subr.bf16.mxu1 %v1565_v7 }
 0x5f2   :  { %584 = vmatpush1.bf16.msra.mxu1 %v1572_v8 }
 0x5f3   :  { %767 = vmatprep.subr.bf16.mxu1 %v1523_v0 }
 0x648   :  { %v453_v38 = vpop.permute.xlu1 %452 }
 0x6b8   :  { %v421_v19 = vpop.f32.mrb[4].mxu1 }
 0x6b9   :  { %v431_v20 = vadd.f32 %v1210_v46, %v421_v19  ;;  %v423_v21 = vpop.f32.mrb[5].mxu1 }
 0x6ba   :  { %v432_v22 = vadd.f32 %v1211_v18, %v423_v21  ;;  %v425_v23 = vpop.f32.mrb[6].mxu1 }
 0x6bb   :  { %v1212_v24 = vmul.f32 -1.442695, %v431_v20  ;;  %v426_v25 = vpop.f32.mrb[7].mxu1 }
 0x6bc   :  { %v434_v26 = vmul.f32 %v432_v22, %v1601_v17 }
 0x6bd   :  { %1398 = vpow2.f32 %v1212_v24 }
 0x6be   :  { %v1213_v27 = vmul.f32 -1.442695, %v434_v26 }
 0x6c0   :  { %1400 = vpow2.f32 %v1213_v27  ;;  %v1456_v27 = vmov 3  }
 0x6c7   :  { %v1399_v0 = vpop.eup %1398 }
 0x6c8   :  { %v441_v32 = vadd.f32 1.0, %v1399_v0  ;;  %v559_v0 = vsel %vm53_vm1, 4, %v1456_v27 }
 0x6c9   :  { %vm560_vm7 = vcmp.lt.s32.totalorder %v559_v0, %v1617_v42 }
 0x6ca   :  { %v1401_v28 = vpop.eup %1400 }
 0x6cb   :  { %v442_v29 = vadd.f32 1.0, %v1401_v28 }
 0x6cd   :  { %1402 = vrcp.f32 %v442_v29 }
 0x6ce   :  { %1404 = vrcp.f32 %v441_v32 }
 0x6d7   :  { %v1403_v33 = vpop.eup %1402 }
 0x6d8   :  { %v448_v34 = vmul.f32 %v1403_v33, %v1601_v17  ;;  %v1405_v36 = vpop.eup %1404 }
 0x6d9   :  { %v455_v39 = vmul.f32 %v1405_v36, %v453_v38 }
 0x6da   :  { %v450_v35 = vsub.f32 %v448_v34, %v1606_v31 }
 0x6dc   :  { %v456_v37 = vmul.f32 %v1405_v36, %v450_v35 }
 0x6de   :  { %458 = vrot.lane.b32.xlu0 %v456_v37, %s1451_s17 }
 0x750   :  { %v459_v40 = vpop.permute.xlu0 %458 }
 0x751   :  { %v461_v41 = vadd.f32 %v459_v40, %v455_v39 }
 0x753   :  { %1406 = vtanh.f32 %v461_v41  ;;  %472 = vrot.lane.b32.xlu0 %v461_v41, %s1451_s17 }
 0x75d   :  { %v1407_v43 = vpop.eup %1406 }
 0x75e   :  { %v463_v44 = vmul.f32 %v1407_v43, %v450_v35 }
 0x760   :  { %467 = vrot.lane.b32.xlu1 %v463_v44, %s1451_s17 }
 0x7c5   :  { %v473_v48 = vpop.permute.xlu0 %472 }
 0x7c6   :  { %v475_v49 = vsel %vm465_vm6, %v473_v48, %v380_v63 }
 0x7c7   :  { %547 = vrot.lane.b32.xlu1 %v475_v49, %s1451_s17 }
 0x7d2   :  { %v468_v50 = vpop.permute.xlu1 %467 }
 0x7d3   :  { %v470_v51 = vsel %vm465_vm6, %v468_v50, %v375_v13  ;;  %v476_v52 = vsel %vm465_vm6, %v468_v50, 0.0 }
 0x7d4   :  { %v477_v53 = vmax.f32 %v1687_v15, %v476_v52  ;;  %v478_v54 = vpack.c.bf16 %v470_v51, %v470_v51 }
 0x7d6   :  { %1214 = vmatmul.mubr.msk.bf16.vlgmr.msra.gmra.mrb[8].mxu0 %vm105_vm3, %v478_v54 }
 0x7d7   :  { %673 = vmatpush1.bf16.msra.mxu0 %v1530_v2  ;;  %704 = vmatprep.mubr.bf16.mxu0 %v1448_v1 }
 0x7d8   :  { %674 = vmatprep.subr.bf16.mxu0 %v1537_v3 }
 0x7db   :  { %675 = vmatpush1.bf16.msra.mxu0 %v1544_v4 }
 0x7dc   :  { %676 = vmatprep.subr.bf16.mxu0 %v1551_v5 }
 0x7df   :  { %677 = vmatpush1.bf16.msra.mxu0 %v1558_v6 }
 0x7e0   :  { %678 = vmatprep.subr.bf16.mxu0 %v1565_v7 }
 0x7e3   :  { %679 = vmatpush1.bf16.msra.mxu0 %v1572_v8 }
 0x7e4   :  { %1277 = vmatprep.subr.bf16.mxu0 %v1450_v30 }
 0x839   :  { %v548_v21 = vpop.permute.xlu1 %547 }
 0x8a9   :  { %v516_v57 = vpop.f32.mrb[8].mxu0 }
 0x8aa   :  { %v526_v58 = vadd.f32 %v1215_v55, %v516_v57  ;;  %v518_v59 = vpop.f32.mrb[9].mxu0 }
 0x8ab   :  { %v527_v60 = vadd.f32 %v1216_v56, %v518_v59  ;;  %v520_v61 = vpop.f32.mrb[10].mxu0 }
 0x8ac   :  { %v1217_v62 = vmul.f32 -1.442695, %v526_v58  ;;  %v521_v63 = vpop.f32.mrb[11].mxu0  ;;  %v1457_v58 = vmov 2  }
 0x8ad   :  { %v529_v9 = vmul.f32 %v527_v60, %v1601_v17  ;;  %v654_v59 = vsel %vm53_vm1, 5, %v1457_v58 }
 0x8ae   :  { %1408 = vpow2.f32 %v1217_v62  ;;  %vm655_vm8 = vcmp.lt.s32.totalorder %v654_v59, %v1617_v42 }
 0x8af   :  { %v1218_v11 = vmul.f32 -1.442695, %v529_v9 }
 0x8b1   :  { %1410 = vpow2.f32 %v1218_v11 }
 0x8b8   :  { %v1409_v12 = vpop.eup %1408 }
 0x8b9   :  { %v536_v15 = vadd.f32 1.0, %v1409_v12 }
 0x8bb   :  { %v1411_v13 = vpop.eup %1410 }
 0x8bc   :  { %v537_v14 = vadd.f32 1.0, %v1411_v13  ;;  %v1225_v13 = vld [vmem:[%s1899_s0 + $0x60] sm:$0xff] }
 0x8be   :  { %1412 = vrcp.f32 %v537_v14  ;;  %v1226_v14 = vld [vmem:[%s1899_s0 + $0x68] sm:$0xff] }
 0x8bf   :  { %1414 = vrcp.f32 %v536_v15 }
 0x8c8   :  { %v1413_v16 = vpop.eup %1412 }
 0x8c9   :  { %v543_v46 = vmul.f32 %v1413_v16, %v1601_v17  ;;  %v1415_v19 = vpop.eup %1414 }
 0x8ca   :  { %v550_v22 = vmul.f32 %v1415_v19, %v548_v21 }
 0x8cb   :  { %v545_v18 = vsub.f32 %v543_v46, %v1606_v31 }
 0x8cd   :  { %v551_v20 = vmul.f32 %v1415_v19, %v545_v18 }
 0x8cf   :  { %553 = vrot.lane.b32.xlu0 %v551_v20, %s1451_s17 }
 0x941   :  { %v554_v23 = vpop.permute.xlu0 %553 }
 0x942   :  { %v556_v24 = vadd.f32 %v554_v23, %v550_v22 }
 0x944   :  { %1416 = vtanh.f32 %v556_v24  ;;  %567 = vrot.lane.b32.xlu0 %v556_v24, %s1451_s17 }
 0x94e   :  { %v1417_v25 = vpop.eup %1416 }
 0x94f   :  { %v558_v26 = vmul.f32 %v1417_v25, %v545_v18 }
 0x951   :  { %562 = vrot.lane.b32.xlu1 %v558_v26, %s1451_s17 }
 0x9b6   :  { %v568_v28 = vpop.permute.xlu0 %567 }
 0x9b7   :  { %v570_v29 = vsel %vm560_vm7, %v568_v28, %v475_v49 }
 0x9b8   :  { %642 = vrot.lane.b32.xlu1 %v570_v29, %s1451_s17 }
 0x9c3   :  { %v563_v32 = vpop.permute.xlu1 %562 }
 0x9c4   :  { %v565_v33 = vsel %vm560_vm7, %v563_v32, %v470_v51  ;;  %v571_v34 = vsel %vm560_vm7, %v563_v32, 0.0 }
 0x9c5   :  { %v1742_v35 = vmax.f32 %v477_v53, %v571_v34  ;;  %v573_v36 = vpack.c.bf16 %v565_v33, %v565_v33 }
 0x9c7   :  { %1219 = vmatmul.mubr.msk.bf16.vlgmr.msra.gmra.mrb[8].mxu1 %vm105_vm3, %v573_v36 }
 0x9c8   :  { %768 = vmatpush1.bf16.msra.mxu1 %v1530_v2  ;;  %799 = vmatprep.mubr.bf16.mxu1 %v1448_v1  ;;  %v1220_v2 = vld [vmem:[%s1899_s0 + $0x50] sm:$0xff] }
 0x9c9   :  { %769 = vmatprep.subr.bf16.mxu1 %v1537_v3  ;;  %v1221_v3 = vld [vmem:[%s1899_s0 + $0x58] sm:$0xff] }
 0x9cc   :  { %770 = vmatpush1.bf16.msra.mxu1 %v1544_v4 }
 0x9cd   :  { %771 = vmatprep.subr.bf16.mxu1 %v1551_v5 }
 0x9d0   :  { %772 = vmatpush1.bf16.msra.mxu1 %v1558_v6 }
 0x9d1   :  { %773 = vmatprep.subr.bf16.mxu1 %v1565_v7 }
 0x9d4   :  { %774 = vmatpush1.bf16.msra.mxu1 %v1572_v8 }
 0x9d5   :  { %1289 = vmatprep.subr.bf16.mxu1 %v1450_v30 }
 0xa2a   :  { %v643_v52 = vpop.permute.xlu1 %642 }
 0xa9a   :  { %v611_v37 = vpop.f32.mrb[8].mxu1 }
 0xa9b   :  { %v621_v4 = vadd.f32 %v1220_v2, %v611_v37  ;;  %v613_v38 = vpop.f32.mrb[9].mxu1 }
 0xa9c   :  { %v622_v5 = vadd.f32 %v1221_v3, %v613_v38  ;;  %v615_v39 = vpop.f32.mrb[10].mxu1 }
 0xa9d   :  { %v1222_v6 = vmul.f32 -1.442695, %v621_v4  ;;  %v616_v40 = vpop.f32.mrb[11].mxu1  ;;  %v1458_v4 = vmov 1  }
 0xa9e   :  { %v624_v7 = vmul.f32 %v622_v5, %v1601_v17  ;;  %v749_v38 = vsel %vm53_vm1, 6, %v1458_v4 }
 0xa9f   :  { %1418 = vpow2.f32 %v1222_v6  ;;  %vm750_vm9 = vcmp.lt.s32.totalorder %v749_v38, %v1617_v42 }
 0xaa0   :  { %v1223_v8 = vmul.f32 -1.442695, %v624_v7 }
 0xaa2   :  { %1420 = vpow2.f32 %v1223_v8 }
 0xaa9   :  { %v1419_v41 = vpop.eup %1418 }
 0xaaa   :  { %v631_v45 = vadd.f32 1.0, %v1419_v41 }
 0xaac   :  { %v1421_v43 = vpop.eup %1420 }
 0xaad   :  { %v632_v44 = vadd.f32 1.0, %v1421_v43  ;;  %v1230_v43 = vld [vmem:[%s1899_s0 + $0x70] sm:$0xff] }
 0xaaf   :  { %1422 = vrcp.f32 %v632_v44  ;;  %v1231_v44 = vld [vmem:[%s1899_s0 + $0x78] sm:$0xff] }
 0xab0   :  { %1424 = vrcp.f32 %v631_v45 }
 0xab9   :  { %v1423_v47 = vpop.eup %1422 }
 0xaba   :  { %v638_v48 = vmul.f32 %v1423_v47, %v1601_v17  ;;  %v1425_v50 = vpop.eup %1424 }
 0xabb   :  { %v645_v53 = vmul.f32 %v1425_v50, %v643_v52 }
 0xabc   :  { %v640_v49 = vsub.f32 %v638_v48, %v1606_v31 }
 0xabe   :  { %v646_v51 = vmul.f32 %v1425_v50, %v640_v49 }
 0xac0   :  { %648 = vrot.lane.b32.xlu0 %v646_v51, %s1451_s17 }
 0xb32   :  { %v649_v54 = vpop.permute.xlu0 %648 }
 0xb33   :  { %v651_v55 = vadd.f32 %v649_v54, %v645_v53 }
 0xb35   :  { %1426 = vtanh.f32 %v651_v55  ;;  %662 = vrot.lane.b32.xlu0 %v651_v55, %s1451_s17 }
 0xb3f   :  { %v1427_v56 = vpop.eup %1426 }
 0xb40   :  { %v653_v57 = vmul.f32 %v1427_v56, %v640_v49 }
 0xb42   :  { %657 = vrot.lane.b32.xlu1 %v653_v57, %s1451_s17 }
 0xba7   :  { %v663_v60 = vpop.permute.xlu0 %662 }
 0xba8   :  { %v665_v61 = vsel %vm655_vm8, %v663_v60, %v570_v29 }
 0xba9   :  { %737 = vrot.lane.b32.xlu1 %v665_v61, %s1451_s17 }
 0xbb4   :  { %v658_v62 = vpop.permute.xlu1 %657 }
 0xbb5   :  { %v660_v63 = vsel %vm655_vm8, %v658_v62, %v565_v33  ;;  %v666_v9 = vsel %vm655_vm8, %v658_v62, 0.0 }
 0xbb6   :  { %v667_v11 = vmax.f32 %v1742_v35, %v666_v9  ;;  %v668_v12 = vpack.c.bf16 %v660_v63, %v660_v63  ;;  %v1352_v9 = vld [vmem:[%s1901_s4] sm:$0xff]  }
 0xbb8   :  { %1224 = vmatmul.mubr.msk.bf16.vlgmr.msra.gmra.mrb[12].mxu0 %vm105_vm3, %v668_v12 }
 0xbb9   :  { %1278 = vmatpush3.bf16.msra.mxu0 %v1352_v9  ;;  %1285 = vmatprep.mubr.msk.bf16.mxu0 %vm1459_vm10, %v1450_v30 }
 0xbba   :  { %1279 = vmatprep.subr.bf16.mxu0 %v1450_v30 }
 0xc1b   :  { %v738_v34 = vpop.permute.xlu1 %737 }
 0xc8b   :  { %v706_v15 = vpop.f32.mrb[12].mxu0 }
 0xc8c   :  { %v716_v16 = vadd.f32 %v1225_v13, %v706_v15  ;;  %v708_v46 = vpop.f32.mrb[13].mxu0  ;;  %v1355_v15 = vld [vmem:[%s1901_s4 + $0x18] sm:$0xff]  }
 0xc8d   :  { %v717_v18 = vadd.f32 %v1226_v14, %v708_v46  ;;  %v710_v19 = vpop.f32.mrb[14].mxu0  ;;  %v953_v46 = vld [vmem:[%s1903_s2] sm:$0xff] }
 0xc8e   :  { %v1227_v20 = vmul.f32 -1.442695, %v716_v16  ;;  %v711_v21 = vpop.f32.mrb[15].mxu0  ;;  %v955_v16 = vld [vmem:[%s1902_s7] sm:$0x3]  ;;  %v954_v19 = vpack.c.bf16 %v953_v46, %v953_v46 }
 0xc8f   :  { %v719_v22 = vmul.f32 %v717_v18, %v1601_v17  ;;  %v962_v18 = vsel %vm960_vm11, %v955_v16, 0 }
 0xc90   :  { %1428 = vpow2.f32 %v1227_v20  ;;  %v1356_v20 = vld [vmem:[%s1904_s6] sm:$0xff]  }
 0xc91   :  { %v1228_v23 = vmul.f32 -1.442695, %v719_v22 }
 0xc93   :  { %1430 = vpow2.f32 %v1228_v23  ;;  %v1357_v23 = vld [vmem:[%s1904_s6 + $0x8] sm:$0xff]  }
 0xc9a   :  { %v1429_v24 = vpop.eup %1428 }
 0xc9b   :  { %v726_v27 = vadd.f32 1.0, %v1429_v24  ;;  %v1358_v24 = vld [vmem:[%s1904_s6 + $0x10] sm:$0xff]  }
 0xc9d   :  { %v1431_v25 = vpop.eup %1430 }
 0xc9e   :  { %v727_v26 = vadd.f32 1.0, %v1431_v25  ;;  %v1359_v25 = vld [vmem:[%s1904_s6 + $0x18] sm:$0xff]  }
 0xca0   :  { %1432 = vrcp.f32 %v727_v26  ;;  %v1360_v26 = vld [vmem:[%s1904_s6 + $0x20] sm:$0xff]  }
 0xca1   :  { %1434 = vrcp.f32 %v726_v27  ;;  %v1361_v27 = vld [vmem:[%s1904_s6 + $0x28] sm:$0xff]  }
 0xcaa   :  { %v1433_v0 = vpop.eup %1432 }
 0xcab   :  { %v733_v28 = vmul.f32 %v1433_v0, %v1601_v17  ;;  %v1435_v32 = vpop.eup %1434  ;;  %v844_v0 = vsel %vm53_vm1, 7, %v1448_v1  ;;  %v1363_v1 = vld [vmem:[%s1904_s6 + $0x38] sm:$0xff]  }
 0xcac   :  { %v740_v35 = vmul.f32 %v1435_v32, %v738_v34  ;;  %vm845_vm13 = vcmp.lt.s32.totalorder %v844_v0, %v1617_v42  ;;  %v1362_v34 = vld [vmem:[%s1904_s6 + $0x30] sm:$0xff]  }
 0xcad   :  { %v735_v29 = vsub.f32 %v733_v28, %v1606_v31 }
 0xcaf   :  { %v741_v33 = vmul.f32 %v1435_v32, %v735_v29 }
 0xcb1   :  { %743 = vrot.lane.b32.xlu0 %v741_v33, %s1451_s17 }
 0xd23   :  { %v744_v36 = vpop.permute.xlu0 %743 }
 0xd24   :  { %v746_v2 = vadd.f32 %v744_v36, %v740_v35  ;;  %v1364_v35 = vld [vmem:[%s1905_s9] sm:$0xff]  }
 0xd26   :  { %1436 = vtanh.f32 %v746_v2  ;;  %757 = vrot.lane.b32.xlu0 %v746_v2, %s1451_s17 }
 0xd30   :  { %v1437_v3 = vpop.eup %1436 }
 0xd31   :  { %v748_v37 = vmul.f32 %v1437_v3, %v735_v29  ;;  %v1365_v3 = vld [vmem:[%s1905_s9 + $0x8] sm:$0xff]  }
 0xd33   :  { %752 = vrot.lane.b32.xlu1 %v748_v37, %s1451_s17  ;;  %v1234_v37 = vld [vmem:[%s1906_s5] ss:$0 sm:$0xff] }
 0xd98   :  { %v758_v5 = vpop.permute.xlu0 %757 }
 0xd99   :  { %v760_v39 = vsel %vm750_vm9, %v758_v5, %v665_v61 }
 0xd9a   :  { %832 = vrot.lane.b32.xlu1 %v760_v39, %s1451_s17 }
 0xda5   :  { %v753_v6 = vpop.permute.xlu1 %752 }
 0xda6   :  { %v755_v40 = vsel %vm750_vm9, %v753_v6, %v660_v63  ;;  %v761_v7 = vsel %vm750_vm9, %v753_v6, 0.0 }
 0xda7   :  { %v1788_v8 = vmax.f32 %v667_v11, %v761_v7  ;;  %v763_v41 = vpack.c.bf16 %v755_v40, %v755_v40  ;;  %v1353_v11 = vld [vmem:[%s1901_s4 + $0x8] sm:$0xff]  }
 0xda8   :  { %1280 = vmatpush3.bf16.msra.mxu0 %v1353_v11 }
 0xda9   :  { %1229 = vmatmul.mubr.msk.bf16.vlgmr.msra.gmra.mrb[12].mxu1 %vm105_vm3, %v763_v41  ;;  %1281 = vmatprep.subr.bf16.mxu0 %v1450_v30  ;;  %v1367_v41 = vld [vmem:[%s1905_s9 + $0x18] sm:$0xff]  }
 0xdaa   :  { %1291 = vmatprep.mubr.msk.bf16.mxu1 %vm1459_vm10, %v1450_v30  ;;  %1290 = vmatpush3.bf16.msra.mxu1 %v962_v18 }
 0xdab   :  { %1295 = vmatprep.subr.bf16.mxu1 %v1450_v30 }
 0xdb1   :  { %1292 = vmatmul.mubr.msk.bf16.vlgmr.msra.gmra.mrb[16].mxu1 %vm956_vm12, %v954_v19 }
 0xdb2   :  { %1296 = vmatpush3.bf16.msra.mxu1 %v1356_v20  ;;  %1311 = vmatprep.mubr.msk.bf16.mxu1 %vm1459_vm10, %v1450_v30 }
 0xdb3   :  { %1297 = vmatprep.subr.bf16.mxu1 %v1450_v30 }
 0xdb6   :  { %1298 = vmatpush3.bf16.msra.mxu1 %v1357_v23 }
 0xdb7   :  { %1299 = vmatprep.subr.bf16.mxu1 %v1450_v30 }
 0xdba   :  { %1300 = vmatpush3.bf16.msra.mxu1 %v1358_v24 }
 0xdbb   :  { %1301 = vmatprep.subr.bf16.mxu1 %v1450_v30 }
 0xdbe   :  { %1302 = vmatpush3.bf16.msra.mxu1 %v1359_v25 }
 0xdbf   :  { %1303 = vmatprep.subr.bf16.mxu1 %v1450_v30 }
 0xdc2   :  { %1304 = vmatpush3.bf16.msra.mxu1 %v1360_v26 }
 0xdc3   :  { %1305 = vmatprep.subr.bf16.mxu1 %v1450_v30 }
 0xdc6   :  { %1306 = vmatpush3.bf16.msra.mxu1 %v1361_v27 }
 0xdc7   :  { %1307 = vmatprep.subr.bf16.mxu1 %v1450_v30 }
 0xdca   :  { %1308 = vmatpush3.bf16.msra.mxu1 %v1362_v34 }
 0xdcb   :  { %1309 = vmatprep.subr.bf16.mxu1 %v1450_v30 }
 0xdce   :  { %1310 = vmatpush3.bf16.msra.mxu1 %v1363_v1 }
 0xe7c   :  { %v801_v45 = vpop.f32.mrb[12].mxu1 }
 0xe7d   :  { %v811_v47 = vadd.f32 %v1230_v43, %v801_v45  ;;  %v803_v48 = vpop.f32.mrb[13].mxu1 }
 0xe7e   :  { %v812_v49 = vadd.f32 %v1231_v44, %v803_v48  ;;  %v805_v50 = vpop.f32.mrb[14].mxu1  ;;  %v1249_v44 = vld [vmem:[%s1907_s8] ss:$0 sm:$0xff] }
 0xe7f   :  { %v1232_v51 = vmul.f32 -1.442695, %v811_v47  ;;  %v806_v52 = vpop.f32.mrb[15].mxu1 }
 0xe80   :  { %v814_v53 = vmul.f32 %v812_v49, %v1601_v17 }
 0xe81   :  { %1438 = vpow2.f32 %v1232_v51 }
 0xe82   :  { %v1233_v54 = vmul.f32 -1.442695, %v814_v53 }
 0xe84   :  { %1440 = vpow2.f32 %v1233_v54  ;;  %v998_v10 = vpop.f32.mrb[16].mxu1 }
 0xe85   :  { %v1293_v42 = vpop.f32.mrb[17].mxu1 }
 0xe86   :  { %v1001_v36 = vpop.f32.mrb[18].mxu1 }
 0xe87   :  { %v1294_v2 = vpop.f32.mrb[19].mxu1 }
 0xe8b   :  { %v1439_v55 = vpop.eup %1438 }
 0xe8c   :  { %v821_v58 = vadd.f32 1.0, %v1439_v55 }
 0xe8e   :  { %v1441_v56 = vpop.eup %1440 }
 0xe8f   :  { %v822_v57 = vadd.f32 1.0, %v1441_v56 }
 0xe91   :  { %1442 = vrcp.f32 %v822_v57 }
 0xe92   :  { %1444 = vrcp.f32 %v821_v58 }
 0xe9b   :  { %v1443_v59 = vpop.eup %1442 }
 0xe9c   :  { %v828_v60 = vmul.f32 %v1443_v59, %v1601_v17  ;;  %v1445_v62 = vpop.eup %1444  ;;  %v1354_v17 = vld [vmem:[%s1901_s4 + $0x10] sm:$0xff]  }
 0xe9d   :  { %1282 = vmatpush3.bf16.msra.mxu0 %v1354_v17 }
 0xe9e   :  { %v830_v61 = vsub.f32 %v828_v60, %v1606_v31  ;;  %1283 = vmatprep.subr.bf16.mxu0 %v1450_v30  ;;  %v833_v31 = vpop.permute.xlu1 %832 }
 0xe9f   :  { %v835_v12 = vmul.f32 %v1445_v62, %v833_v31 }
 0xea0   :  { %v836_v63 = vmul.f32 %v1445_v62, %v830_v61 }
 0xea1   :  { %1284 = vmatpush3.bf16.msra.mxu0 %v1355_v15 }
 0xea2   :  { %838 = vrot.lane.b32.xlu0 %v836_v63, %s1451_s17  ;;  %1315 = vmatprep.subr.bf16.mxu0 %v1450_v30 }
 0xf14   :  { %v839_v13 = vpop.permute.xlu0 %838 }
 0xf15   :  { %v841_v14 = vadd.f32 %v839_v13, %v835_v12 }
 0xf17   :  { %1446 = vtanh.f32 %v841_v14 }
 0xf21   :  { %v1447_v21 = vpop.eup %1446 }
 0xf22   :  { %v843_v22 = vmul.f32 %v1447_v21, %v830_v61 }
 0xf24   :  { %847 = vrot.lane.b32.xlu1 %v843_v22, %s1451_s17 }
 0xf96   :  { %v848_v28 = vpop.permute.xlu1 %847 }
 0xf97   :  { %v850_v29 = vsel %vm845_vm13, %v848_v28, 0.0 }
 0xf98   :  { %v851_v32 = vmax.f32 %v1788_v8, %v850_v29  ;;  %v1366_v8 = vld [vmem:[%s1905_s9 + $0x10] sm:$0xff]  }
 0xf9a   :  { %v852_v33 = vpack.c.bf16 %v851_v32, %v851_v32 }
 0xf9c   :  { %1286 = vmatmul.mubr.msk.bf16.vlgmr.msra.gmra.mrb[16].mxu0 %vm105_vm3, %v852_v33 }
 0xf9d   :  { %1323 = vmatprep.mubr.msk.bf16.mxu0 %vm1459_vm10, %v1450_v30  ;;  %1316 = vmatpush3.bf16.msra.mxu0 %v1364_v35 }
 0xf9e   :  { %1317 = vmatprep.subr.bf16.mxu0 %v1450_v30 }
 0xfa1   :  { %1318 = vmatpush3.bf16.msra.mxu0 %v1365_v3 }
 0xfa2   :  { %1319 = vmatprep.subr.bf16.mxu0 %v1450_v30 }
 0xfa5   :  { %1320 = vmatpush3.bf16.msra.mxu0 %v1366_v8 }
 0xfa6   :  { %1321 = vmatprep.subr.bf16.mxu0 %v1450_v30  ;;  %v1250_v30 = vld [vmem:[%s1908_s10] ss:$0 sm:$0xff] }
 0xfa9   :  { %1322 = vmatpush3.bf16.msra.mxu0 %v1367_v41 }
0x106f   :  { %v929_v4 = vpop.f32.mrb[16].mxu0 }
0x1070   :  { %v930_v38 = vadd.f32 %v1234_v37, %v929_v4  ;;  %v1287_v5 = vpop.f32.mrb[17].mxu0 }
0x1071   :  { %v932_v39 = vpop.f32.mrb[18].mxu0 }
0x1072   :  { %v935_v6 = vmax.f32 %v930_v38, 0.0  ;;  %v1288_v40 = vpop.f32.mrb[19].mxu0 }
0x1074   :  { %v936_v7 = vpack.c.bf16 %v935_v6, %v935_v6 }
0x1076   :  { %1312 = vmatmul.mubr.bf16.vlgmr.msra.gmra.mrb[20].mxu1 %v936_v7 }
0x1149   :  { %v1086_v43 = vpop.f32.mrb[20].mxu1 }
0x114a   :  { %v1087_v45 = vadd.f32 %v1086_v43, %v998_v10  ;;  %v1313_v47 = vpop.f32.mrb[21].mxu1 }
0x114b   :  { %v1089_v48 = vpop.f32.mrb[22].mxu1 }
0x114c   :  { %v1099_v49 = vadd.f32 %v1249_v44, %v1087_v45  ;;  %v1314_v50 = vpop.f32.mrb[23].mxu1 }
0x114e   :  { %v1100_v51 = vmax.f32 %v1099_v49, 0.0 }
0x1150   :  { %v1101_v52 = vpack.c.bf16 %v1100_v51, %v1100_v51 }
0x1152   :  { %1324 = vmatmul.mubr.msk.bf16.vlgmr.msra.gmra.mrb[20].mxu0 %vm105_vm3, %v1101_v52 }
0x1225   :  { %v1178_v53 = vpop.f32.mrb[20].mxu0 }
0x1226   :  { %v1179_v54 = vadd.f32 %v1250_v30, %v1178_v53  ;;  %v1325_v55 = vpop.f32.mrb[21].mxu0 }
0x1227   :  { %v1181_v56 = vpop.f32.mrb[22].mxu0 }
0x1228   :  { %1184 = vst [vmem:[%s1909_s11] sm:$0xff] %v1179_v54  ;;  %v1326_v57 = vpop.f32.mrb[23].mxu0 }

</bundles_post_ra>
